<compile_context>
chip_gen: v5e
topology: v5e:2x2
jax: 0.10.0
libtpu: 0.0.40
codegen_flags: <defaults>
</compile_context>

<pallas_src>
import functools

import jax
import jax.numpy as jnp
from jax.experimental import pallas as pl
from jax.experimental.pallas import tpu as pltpu

BN_EPS = 1e-3  # nn.BatchNorm1d(eps=0.001)


# ---------------------------------------------------------------------------
# parameter slab layout (shared by the packer and the kernel)
# ---------------------------------------------------------------------------
def _param_layout(num_blocks):
    wi, vi = {}, {}
    w = v = 0

    def nw(name):
        nonlocal w
        wi[name] = w
        w += 1

    def nv(name):
        nonlocal v
        vi[name] = v
        v += 1

    nw("e_init"); nv("e_init_b")
    for blk in range(num_blocks):
        nv(f"e_bn{blk}_0g"); nv(f"e_bn{blk}_0b")
        nw(f"e_blk{blk}_W0"); nv(f"e_blk{blk}_b0")
        nv(f"e_bn{blk}_1g"); nv(f"e_bn{blk}_1b")
        nw(f"e_blk{blk}_W1"); nv(f"e_blk{blk}_b1")
    nw("e_loc"); nv("e_loc_b")
    nw("e_scale"); nv("e_scale_b")

    nw("d_init"); nv("d_init_b")
    for blk in range(num_blocks):
        nv(f"d_bn{blk}_0g"); nv(f"d_bn{blk}_0b")
        nw(f"d_blk{blk}_W0"); nv(f"d_blk{blk}_b0")
        nv(f"d_bn{blk}_1g"); nv(f"d_bn{blk}_1b")
        nw(f"d_blk{blk}_W1"); nv(f"d_blk{blk}_b1")
    nw("d_final"); nv("d_final_b")

    nw("p_W1z"); nv("p_w1_ctx"); nv("p_b1")
    nv("p_bn_g"); nv("p_bn_b")
    nw("p_W2"); nv("p_b2")
    return wi, vi, w, v


# ---------------------------------------------------------------------------
# fused forward kernel
# ---------------------------------------------------------------------------
def beta_vae_kernel(num_blocks, wi, vi, data_ref, w_ref, v_ref, out_ref):
    DP = w_ref.shape[-1]

    data = data_ref[...]
    x = data[:, 0:DP]               # zero-padded input features
    eps = data[:, DP:2 * DP]        # zero-padded reparameterisation noise
    ctx = data[:, 2 * DP:2 * DP + 1]  # context, already view(-1, 1)

    def vrow(name):                 # (1, DP) padded bias / BN param row
        i = vi[name]
        return v_ref[pl.ds(i, 1), :]

    def lin(t, wname, bname):       # y = t @ W + b  (MXU)
        return (jnp.dot(t, w_ref[wi[wname]], preferred_element_type=jnp.float32)
                + vrow(bname))

    def bn(t, gname, bname):        # training-mode BatchNorm1d
        mean = jnp.mean(t, axis=0, keepdims=True)
        var = jnp.mean(t * t, axis=0, keepdims=True) - mean * mean
        inv = jax.lax.rsqrt(var + BN_EPS)
        return (t - mean) * inv * vrow(gname) + vrow(bname)

    def res_block(t, prefix, blk):
        h = bn(t, f"{prefix}_bn{blk}_0g", f"{prefix}_bn{blk}_0b")
        h = jnp.maximum(h, 0.0)
        h = lin(h, f"{prefix}_blk{blk}_W0", f"{prefix}_blk{blk}_b0")
        h = bn(h, f"{prefix}_bn{blk}_1g", f"{prefix}_bn{blk}_1b")
        h = jnp.maximum(h, 0.0)
        h = lin(h, f"{prefix}_blk{blk}_W1", f"{prefix}_blk{blk}_b1")
        return t + h

    # ---------------- encoder ----------------
    t = lin(x, "e_init", "e_init_b")
    for blk in range(num_blocks):
        t = res_block(t, "e", blk)
    mu = lin(t, "e_loc", "e_loc_b")
    logvar = lin(t, "e_scale", "e_scale_b")

    # ---------------- reparameterise ----------------
    z = mu + eps * jnp.exp(0.5 * logvar)

    # ---------------- predictor ----------------
    # cat([z, ctx]) @ W1 == z @ W1[:z_dim] + ctx * W1[z_dim]  (context_dim == 1)
    # The (B,1)x(1,z//2) part is a rank-1 broadcast multiply on the VPU.
    h = (jnp.dot(z, w_ref[wi["p_W1z"]], preferred_element_type=jnp.float32)
         + ctx * vrow("p_w1_ctx")
         + vrow("p_b1"))
    h = bn(h, "p_bn_g", "p_bn_b")
    h = jnp.maximum(h, 0.0)
    out = (jnp.dot(h, w_ref[wi["p_W2"]], preferred_element_type=jnp.float32)
           + vrow("p_b2"))

    # ---------------- decoder ----------------
    d = lin(z, "d_init", "d_init_b")
    for blk in range(num_blocks):
        d = res_block(d, "d", blk)
    recon = lin(d, "d_final", "d_final_b")

    # single lane-dense (B, 4*DP) = (B, 128) output slab:
    # [ out | recon | mu | logvar ], each zero-padded to DP lanes.
    out_ref[...] = jnp.concatenate([out, recon, mu, logvar], axis=1)


# ---------------------------------------------------------------------------
# wrapper: pack inputs into one slab, call kernel, slice the output slab
# ---------------------------------------------------------------------------
def beta_vae_forward(x, context, eps, packed, *, num_blocks, z_dim, in_dim,
                     out_dim, DP=32):
    w_slab, v_slab = packed
    B = x.shape[0]
    ctx = context.reshape(-1, 1).astype(jnp.float32)

    def padcols(a, width):
        return jnp.pad(a, ((0, 0), (0, width - a.shape[1])))

    # data slab: [ x (DP) | eps (DP) | ctx (2*DP, col 0 real) ] -> (B, 4*DP)
    data = jnp.concatenate(
        [padcols(x, DP), padcols(eps, DP), padcols(ctx, 2 * DP)], axis=1)

    wi, vi, _, _ = _param_layout(num_blocks)
    kernel = functools.partial(beta_vae_kernel, num_blocks, wi, vi)

    slab = pl.pallas_call(
        kernel,
        out_shape=jax.ShapeDtypeStruct((B, 4 * DP), jnp.float32),
        in_specs=[pl.BlockSpec(memory_space=pltpu.MemorySpace.VMEM)] * 3,
        out_specs=pl.BlockSpec(memory_space=pltpu.MemorySpace.VMEM),
    )(data, w_slab, v_slab)

    out = slab[:, 0:out_dim]
    recon = slab[:, DP:DP + in_dim]
    mu = slab[:, 2 * DP:2 * DP + z_dim]
    logvar = slab[:, 3 * DP:3 * DP + z_dim]
    return out, recon, mu, logvar


# ---------------------------------------------------------------------------
# host-side parameter packing (runs once)
# ---------------------------------------------------------------------------
def pack_params(params, *, num_blocks, DP=32):
    (e_initW, e_initb, e_bng, e_bnb, e_W, e_b, e_locW, e_locb, e_scW, e_scb,
     d_initW, d_initb, d_bng, d_bnb, d_W, d_b, d_finW, d_finb,
     p_W1, p_b1, p_bng, p_bnb, p_W2, p_b2) = params

    wi, vi, NW, NV = _param_layout(num_blocks)
    z_dim = p_W1.shape[0] - 1  # context_dim == 1

    w_slab = jnp.zeros((NW, DP, DP), jnp.float32)
    v_slab = jnp.zeros((NV, DP), jnp.float32)

    def setW(name, W):
        nonlocal w_slab
        fi, fo = W.shape
        w_slab = w_slab.at[wi[name], :fi, :fo].set(W)

    def setV(name, v):
        nonlocal v_slab
        v = jnp.asarray(v).reshape(-1)
        v_slab = v_slab.at[vi[name], :v.shape[0]].set(v)

    setW("e_init", e_initW); setV("e_init_b", e_initb)
    for blk in range(num_blocks):
        setV(f"e_bn{blk}_0g", e_bng[blk, 0]); setV(f"e_bn{blk}_0b", e_bnb[blk, 0])
        setW(f"e_blk{blk}_W0", e_W[blk, 0]); setV(f"e_blk{blk}_b0", e_b[blk, 0])
        setV(f"e_bn{blk}_1g", e_bng[blk, 1]); setV(f"e_bn{blk}_1b", e_bnb[blk, 1])
        setW(f"e_blk{blk}_W1", e_W[blk, 1]); setV(f"e_blk{blk}_b1", e_b[blk, 1])
    setW("e_loc", e_locW); setV("e_loc_b", e_locb)
    setW("e_scale", e_scW); setV("e_scale_b", e_scb)

    setW("d_init", d_initW); setV("d_init_b", d_initb)
    for blk in range(num_blocks):
        setV(f"d_bn{blk}_0g", d_bng[blk, 0]); setV(f"d_bn{blk}_0b", d_bnb[blk, 0])
        setW(f"d_blk{blk}_W0", d_W[blk, 0]); setV(f"d_blk{blk}_b0", d_b[blk, 0])
        setV(f"d_bn{blk}_1g", d_bng[blk, 1]); setV(f"d_bn{blk}_1b", d_bnb[blk, 1])
        setW(f"d_blk{blk}_W1", d_W[blk, 1]); setV(f"d_blk{blk}_b1", d_b[blk, 1])
    setW("d_final", d_finW); setV("d_final_b", d_finb)

    setW("p_W1z", p_W1[:z_dim]); setV("p_w1_ctx", p_W1[z_dim]); setV("p_b1", p_b1)
    setV("p_bn_g", p_bng); setV("p_bn_b", p_bnb)
    setW("p_W2", p_W2); setV("p_b2", p_b2)
    return w_slab, v_slab


# ---------------------------------------------------------------------------
# pure-JAX reference (natural per-layer params) for correctness checking
# ---------------------------------------------------------------------------
def _linear(t, W, b):
    return jnp.dot(t, W, preferred_element_type=jnp.float32) + b


def _batch_norm(t, gamma, beta):
    mean = jnp.mean(t, axis=0, keepdims=True)
    var = jnp.mean((t - mean) ** 2, axis=0, keepdims=True)
    inv = jax.lax.rsqrt(var + BN_EPS)
    return (t - mean) * inv * gamma + beta


def _res_block(t, bn_g, bn_b, Ws, bs):
    h = _batch_norm(t, bn_g[0][None, :], bn_b[0][None, :])
    h = jnp.maximum(h, 0.0)
    h = _linear(h, Ws[0], bs[0][None, :])
    h = _batch_norm(h, bn_g[1][None, :], bn_b[1][None, :])
    h = jnp.maximum(h, 0.0)
    h = _linear(h, Ws[1], bs[1][None, :])
    return t + h


def ref_forward(x, ctx, eps, params, *, num_blocks, z_dim):
    (e_initW, e_initb, e_bng, e_bnb, e_W, e_b, e_locW, e_locb, e_scW, e_scb,
     d_initW, d_initb, d_bng, d_bnb, d_W, d_b, d_finW, d_finb,
     p_W1, p_b1, p_bng, p_bnb, p_W2, p_b2) = params

    t = _linear(x, e_initW, e_initb)
    for blk in range(num_blocks):
        t = _res_block(t, e_bng[blk], e_bnb[blk], e_W[blk], e_b[blk])
    mu = _linear(t, e_locW, e_locb)
    logvar = _linear(t, e_scW, e_scb)

    z = mu + eps * jnp.exp(0.5 * logvar)

    zc = jnp.concatenate([z, ctx], axis=1)
    h = _linear(zc, p_W1, p_b1)
    h = _batch_norm(h, p_bng, p_bnb)
    h = jnp.maximum(h, 0.0)
    out = _linear(h, p_W2, p_b2)

    d = _linear(z, d_initW, d_initb)
    for blk in range(num_blocks):
        d = _res_block(d, d_bng[blk], d_bnb[blk], d_W[blk], d_b[blk])
    recon = _linear(d, d_finW, d_finb)
    return out, recon, mu, logvar


# ---------------------------------------------------------------------------
# deterministic parameter initialization (shapes from the PyTorch __init__)
# ---------------------------------------------------------------------------
def init_params(key, in_dim, out_dim, z_dim, hidden_dim, context_dim, num_blocks):
    key_iter = iter(jax.random.split(key, 128))

    def lin(fan_in, fan_out):
        bound = 1.0 / float(fan_in) ** 0.5
        W = jax.random.uniform(next(key_iter), (fan_in, fan_out), jnp.float32,
                               -bound, bound)
        b = jax.random.uniform(next(key_iter), (1, fan_out), jnp.float32,
                               -bound, bound)
        return W, b

    def blocks(dim):
        Ws, bs = [], []
        for _ in range(num_blocks):
            W1, b1 = lin(dim, dim)
            # ResidualBlock.reset_parameters: second linear ~ N(0, 0.001), bias = 0
            W2 = 0.001 * jax.random.normal(next(key_iter), (dim, dim), jnp.float32)
            b2 = jnp.zeros((1, dim), jnp.float32)
            Ws.append(jnp.stack([W1, W2]))
            bs.append(jnp.stack([b1[0], b2[0]]))
        bng = jnp.ones((num_blocks, 2, dim), jnp.float32)
        bnb = jnp.zeros((num_blocks, 2, dim), jnp.float32)
        return bng, bnb, jnp.stack(Ws), jnp.stack(bs)

    e_initW, e_initb = lin(in_dim, hidden_dim)
    e_bng, e_bnb, e_W, e_b = blocks(hidden_dim)
    e_locW, e_locb = lin(hidden_dim, z_dim)
    e_scW, e_scb = lin(hidden_dim, z_dim)

    d_initW, d_initb = lin(z_dim, hidden_dim)
    d_bng, d_bnb, d_W, d_b = blocks(hidden_dim)
    d_finW, d_finb = lin(hidden_dim, in_dim)

    p_W1, p_b1 = lin(z_dim + context_dim, z_dim // 2)
    p_bng = jnp.ones((1, z_dim // 2), jnp.float32)
    p_bnb = jnp.zeros((1, z_dim // 2), jnp.float32)
    p_W2, p_b2 = lin(z_dim // 2, out_dim)

    return (e_initW, e_initb, e_bng, e_bnb, e_W, e_b, e_locW, e_locb, e_scW, e_scb,
            d_initW, d_initb, d_bng, d_bnb, d_W, d_b, d_finW, d_finb,
            p_W1, p_b1, p_bng, p_bnb, p_W2, p_b2)


if __name__ == "__main__":
    B, in_dim, out_dim = 8, 16, 4
    z_dim, hidden_dim, context_dim, num_blocks = 8, 32, 1, 2
    DP = max(32, in_dim, out_dim, hidden_dim, z_dim)  # padded feature width

    root = jax.random.PRNGKey(0)
    k_params, k_x, k_ctx, k_eps = jax.random.split(root, 4)

    params = init_params(k_params, in_dim, out_dim, z_dim, hidden_dim,
                         context_dim, num_blocks)
    packed = pack_params(params, num_blocks=num_blocks, DP=DP)

    x = jax.random.normal(k_x, (B, in_dim), jnp.float32)
    context = jax.random.normal(k_ctx, (B,), jnp.float32)
    eps = jax.random.normal(k_eps, (B, z_dim), jnp.float32)

    outs = beta_vae_forward(x, context, eps, packed, num_blocks=num_blocks,
                            z_dim=z_dim, in_dim=in_dim, out_dim=out_dim, DP=DP)
    outs = jax.block_until_ready(outs)

    refs = ref_forward(x, context.reshape(-1, 1), eps, params,
                       num_blocks=num_blocks, z_dim=z_dim)
    refs = jax.block_until_ready(refs)

    names = ("outputs", "recon_inputs", "mu", "logvar")
    for name, got, want in zip(names, outs, refs):
        assert got.shape == want.shape, (name, got.shape, want.shape)
        assert jnp.allclose(got, want, atol=1e-3, rtol=1e-3), (
            f"{name} mismatch: max abs err = {jnp.max(jnp.abs(got - want))}")

    print("KERNEL_OK")
</pallas_src>

<mosaic_0001>
module attributes {stable_mosaic.version = 11 : i64} {
  func.func @beta_vae_kernel(%arg0: memref<8x128xf32, #tpu.memory_space<vmem>>, %arg1: memref<15x32x32xf32, #tpu.memory_space<vmem>>, %arg2: memref<34x32xf32, #tpu.memory_space<vmem>>, %arg3: memref<8x128xf32, #tpu.memory_space<vmem>>) attributes {dimension_semantics = [], scalar_prefetch = 0 : i64, scratch_operands = 0 : i64, tpu.core_type = #tpu.core_type<tc>} {
    %c0 = arith.constant 0 : index
    %c0_0 = arith.constant 0 : index
    %0 = vector.load %arg0[%c0, %c0_0] : memref<8x128xf32, #tpu.memory_space<vmem>>, vector<8x128xf32>
    %1 = vector.extract_strided_slice %0 {offsets = [0, 0], sizes = [8, 32], strides = [1, 1]} : vector<8x128xf32> to vector<8x32xf32>
    %2 = vector.extract_strided_slice %0 {offsets = [0, 32], sizes = [8, 32], strides = [1, 1]} : vector<8x128xf32> to vector<8x32xf32>
    %3 = vector.extract_strided_slice %0 {offsets = [0, 64], sizes = [8, 1], strides = [1, 1]} : vector<8x128xf32> to vector<8x1xf32>
    %c0_1 = arith.constant 0 : index
    %c0_2 = arith.constant 0 : index
    %c0_3 = arith.constant 0 : index
    %4 = vector.load %arg1[%c0_1, %c0_2, %c0_3] : memref<15x32x32xf32, #tpu.memory_space<vmem>>, vector<1x32x32xf32>
    %5 = vector.shape_cast %4 : vector<1x32x32xf32> to vector<32x32xf32>
    %cst = arith.constant dense<0.000000e+00> : vector<8x32xf32>
    %6 = tpu.matmul %1, %5, %cst {dimension_numbers = #tpu.dot_dimension_numbers<[1], [0], [0], [1], [0, 0, 1, 1], [], []>} : vector<8x32xf32>, vector<32x32xf32>, vector<8x32xf32> -> vector<8x32xf32>
    %c0_4 = arith.constant 0 : index
    %c0_5 = arith.constant 0 : index
    %7 = vector.load %arg2[%c0_4, %c0_5] : memref<34x32xf32, #tpu.memory_space<vmem>>, vector<1x32xf32>
    %8 = vector.broadcast %7 : vector<1x32xf32> to vector<8x32xf32>
    %9 = arith.addf %6, %8 : vector<8x32xf32>
    %cst_6 = arith.constant dense<0.000000e+00> : vector<32xf32>
    %10 = vector.multi_reduction <add>, %9, %cst_6 [0] : vector<8x32xf32> to vector<32xf32>
    %11 = vector.shape_cast %10 : vector<32xf32> to vector<1x32xf32>
    %cst_7 = arith.constant 8.000000e+00 : f32
    %12 = vector.broadcast %cst_7 : f32 to vector<1x32xf32>
    %13 = arith.divf %11, %12 : vector<1x32xf32>
    %14 = arith.mulf %9, %9 : vector<8x32xf32>
    %cst_8 = arith.constant dense<0.000000e+00> : vector<32xf32>
    %15 = vector.multi_reduction <add>, %14, %cst_8 [0] : vector<8x32xf32> to vector<32xf32>
    %16 = vector.shape_cast %15 : vector<32xf32> to vector<1x32xf32>
    %cst_9 = arith.constant 8.000000e+00 : f32
    %17 = vector.broadcast %cst_9 : f32 to vector<1x32xf32>
    %18 = arith.divf %16, %17 : vector<1x32xf32>
    %19 = arith.mulf %13, %13 : vector<1x32xf32>
    %20 = arith.subf %18, %19 : vector<1x32xf32>
    %cst_10 = arith.constant 1.000000e-03 : f32
    %21 = vector.broadcast %cst_10 : f32 to vector<1x32xf32>
    %22 = arith.addf %20, %21 : vector<1x32xf32>
    %23 = math.rsqrt %22 : vector<1x32xf32>
    %24 = vector.broadcast %13 : vector<1x32xf32> to vector<8x32xf32>
    %25 = arith.subf %9, %24 : vector<8x32xf32>
    %26 = vector.broadcast %23 : vector<1x32xf32> to vector<8x32xf32>
    %27 = arith.mulf %25, %26 : vector<8x32xf32>
    %c1 = arith.constant 1 : index
    %c0_11 = arith.constant 0 : index
    %28 = vector.load %arg2[%c1, %c0_11] : memref<34x32xf32, #tpu.memory_space<vmem>>, vector<1x32xf32>
    %29 = vector.broadcast %28 : vector<1x32xf32> to vector<8x32xf32>
    %30 = arith.mulf %27, %29 : vector<8x32xf32>
    %c2 = arith.constant 2 : index
    %c0_12 = arith.constant 0 : index
    %31 = vector.load %arg2[%c2, %c0_12] : memref<34x32xf32, #tpu.memory_space<vmem>>, vector<1x32xf32>
    %32 = vector.broadcast %31 : vector<1x32xf32> to vector<8x32xf32>
    %33 = arith.addf %30, %32 : vector<8x32xf32>
    %cst_13 = arith.constant 0.000000e+00 : f32
    %34 = vector.broadcast %cst_13 : f32 to vector<8x32xf32>
    %35 = arith.maximumf %33, %34 : vector<8x32xf32>
    %c1_14 = arith.constant 1 : index
    %c0_15 = arith.constant 0 : index
    %c0_16 = arith.constant 0 : index
    %36 = vector.load %arg1[%c1_14, %c0_15, %c0_16] : memref<15x32x32xf32, #tpu.memory_space<vmem>>, vector<1x32x32xf32>
    %37 = vector.shape_cast %36 : vector<1x32x32xf32> to vector<32x32xf32>
    %cst_17 = arith.constant dense<0.000000e+00> : vector<8x32xf32>
    %38 = tpu.matmul %35, %37, %cst_17 {dimension_numbers = #tpu.dot_dimension_numbers<[1], [0], [0], [1], [0, 0, 1, 1], [], []>} : vector<8x32xf32>, vector<32x32xf32>, vector<8x32xf32> -> vector<8x32xf32>
    %c3 = arith.constant 3 : index
    %c0_18 = arith.constant 0 : index
    %39 = vector.load %arg2[%c3, %c0_18] : memref<34x32xf32, #tpu.memory_space<vmem>>, vector<1x32xf32>
    %40 = vector.broadcast %39 : vector<1x32xf32> to vector<8x32xf32>
    %41 = arith.addf %38, %40 : vector<8x32xf32>
    %cst_19 = arith.constant dense<0.000000e+00> : vector<32xf32>
    %42 = vector.multi_reduction <add>, %41, %cst_19 [0] : vector<8x32xf32> to vector<32xf32>
    %43 = vector.shape_cast %42 : vector<32xf32> to vector<1x32xf32>
    %cst_20 = arith.constant 8.000000e+00 : f32
    %44 = vector.broadcast %cst_20 : f32 to vector<1x32xf32>
    %45 = arith.divf %43, %44 : vector<1x32xf32>
    %46 = arith.mulf %41, %41 : vector<8x32xf32>
    %cst_21 = arith.constant dense<0.000000e+00> : vector<32xf32>
    %47 = vector.multi_reduction <add>, %46, %cst_21 [0] : vector<8x32xf32> to vector<32xf32>
    %48 = vector.shape_cast %47 : vector<32xf32> to vector<1x32xf32>
    %cst_22 = arith.constant 8.000000e+00 : f32
    %49 = vector.broadcast %cst_22 : f32 to vector<1x32xf32>
    %50 = arith.divf %48, %49 : vector<1x32xf32>
    %51 = arith.mulf %45, %45 : vector<1x32xf32>
    %52 = arith.subf %50, %51 : vector<1x32xf32>
    %cst_23 = arith.constant 1.000000e-03 : f32
    %53 = vector.broadcast %cst_23 : f32 to vector<1x32xf32>
    %54 = arith.addf %52, %53 : vector<1x32xf32>
    %55 = math.rsqrt %54 : vector<1x32xf32>
    %56 = vector.broadcast %45 : vector<1x32xf32> to vector<8x32xf32>
    %57 = arith.subf %41, %56 : vector<8x32xf32>
    %58 = vector.broadcast %55 : vector<1x32xf32> to vector<8x32xf32>
    %59 = arith.mulf %57, %58 : vector<8x32xf32>
    %c4 = arith.constant 4 : index
    %c0_24 = arith.constant 0 : index
    %60 = vector.load %arg2[%c4, %c0_24] : memref<34x32xf32, #tpu.memory_space<vmem>>, vector<1x32xf32>
    %61 = vector.broadcast %60 : vector<1x32xf32> to vector<8x32xf32>
    %62 = arith.mulf %59, %61 : vector<8x32xf32>
    %c5 = arith.constant 5 : index
    %c0_25 = arith.constant 0 : index
    %63 = vector.load %arg2[%c5, %c0_25] : memref<34x32xf32, #tpu.memory_space<vmem>>, vector<1x32xf32>
    %64 = vector.broadcast %63 : vector<1x32xf32> to vector<8x32xf32>
    %65 = arith.addf %62, %64 : vector<8x32xf32>
    %cst_26 = arith.constant 0.000000e+00 : f32
    %66 = vector.broadcast %cst_26 : f32 to vector<8x32xf32>
    %67 = arith.maximumf %65, %66 : vector<8x32xf32>
    %c2_27 = arith.constant 2 : index
    %c0_28 = arith.constant 0 : index
    %c0_29 = arith.constant 0 : index
    %68 = vector.load %arg1[%c2_27, %c0_28, %c0_29] : memref<15x32x32xf32, #tpu.memory_space<vmem>>, vector<1x32x32xf32>
    %69 = vector.shape_cast %68 : vector<1x32x32xf32> to vector<32x32xf32>
    %cst_30 = arith.constant dense<0.000000e+00> : vector<8x32xf32>
    %70 = tpu.matmul %67, %69, %cst_30 {dimension_numbers = #tpu.dot_dimension_numbers<[1], [0], [0], [1], [0, 0, 1, 1], [], []>} : vector<8x32xf32>, vector<32x32xf32>, vector<8x32xf32> -> vector<8x32xf32>
    %c6 = arith.constant 6 : index
    %c0_31 = arith.constant 0 : index
    %71 = vector.load %arg2[%c6, %c0_31] : memref<34x32xf32, #tpu.memory_space<vmem>>, vector<1x32xf32>
    %72 = vector.broadcast %71 : vector<1x32xf32> to vector<8x32xf32>
    %73 = arith.addf %70, %72 : vector<8x32xf32>
    %74 = arith.addf %9, %73 : vector<8x32xf32>
    %cst_32 = arith.constant dense<0.000000e+00> : vector<32xf32>
    %75 = vector.multi_reduction <add>, %74, %cst_32 [0] : vector<8x32xf32> to vector<32xf32>
    %76 = vector.shape_cast %75 : vector<32xf32> to vector<1x32xf32>
    %cst_33 = arith.constant 8.000000e+00 : f32
    %77 = vector.broadcast %cst_33 : f32 to vector<1x32xf32>
    %78 = arith.divf %76, %77 : vector<1x32xf32>
    %79 = arith.mulf %74, %74 : vector<8x32xf32>
    %cst_34 = arith.constant dense<0.000000e+00> : vector<32xf32>
    %80 = vector.multi_reduction <add>, %79, %cst_34 [0] : vector<8x32xf32> to vector<32xf32>
    %81 = vector.shape_cast %80 : vector<32xf32> to vector<1x32xf32>
    %cst_35 = arith.constant 8.000000e+00 : f32
    %82 = vector.broadcast %cst_35 : f32 to vector<1x32xf32>
    %83 = arith.divf %81, %82 : vector<1x32xf32>
    %84 = arith.mulf %78, %78 : vector<1x32xf32>
    %85 = arith.subf %83, %84 : vector<1x32xf32>
    %cst_36 = arith.constant 1.000000e-03 : f32
    %86 = vector.broadcast %cst_36 : f32 to vector<1x32xf32>
    %87 = arith.addf %85, %86 : vector<1x32xf32>
    %88 = math.rsqrt %87 : vector<1x32xf32>
    %89 = vector.broadcast %78 : vector<1x32xf32> to vector<8x32xf32>
    %90 = arith.subf %74, %89 : vector<8x32xf32>
    %91 = vector.broadcast %88 : vector<1x32xf32> to vector<8x32xf32>
    %92 = arith.mulf %90, %91 : vector<8x32xf32>
    %c7 = arith.constant 7 : index
    %c0_37 = arith.constant 0 : index
    %93 = vector.load %arg2[%c7, %c0_37] : memref<34x32xf32, #tpu.memory_space<vmem>>, vector<1x32xf32>
    %94 = vector.broadcast %93 : vector<1x32xf32> to vector<8x32xf32>
    %95 = arith.mulf %92, %94 : vector<8x32xf32>
    %c8 = arith.constant 8 : index
    %c0_38 = arith.constant 0 : index
    %96 = vector.load %arg2[%c8, %c0_38] : memref<34x32xf32, #tpu.memory_space<vmem>>, vector<1x32xf32>
    %97 = vector.broadcast %96 : vector<1x32xf32> to vector<8x32xf32>
    %98 = arith.addf %95, %97 : vector<8x32xf32>
    %cst_39 = arith.constant 0.000000e+00 : f32
    %99 = vector.broadcast %cst_39 : f32 to vector<8x32xf32>
    %100 = arith.maximumf %98, %99 : vector<8x32xf32>
    %c3_40 = arith.constant 3 : index
    %c0_41 = arith.constant 0 : index
    %c0_42 = arith.constant 0 : index
    %101 = vector.load %arg1[%c3_40, %c0_41, %c0_42] : memref<15x32x32xf32, #tpu.memory_space<vmem>>, vector<1x32x32xf32>
    %102 = vector.shape_cast %101 : vector<1x32x32xf32> to vector<32x32xf32>
    %cst_43 = arith.constant dense<0.000000e+00> : vector<8x32xf32>
    %103 = tpu.matmul %100, %102, %cst_43 {dimension_numbers = #tpu.dot_dimension_numbers<[1], [0], [0], [1], [0, 0, 1, 1], [], []>} : vector<8x32xf32>, vector<32x32xf32>, vector<8x32xf32> -> vector<8x32xf32>
    %c9 = arith.constant 9 : index
    %c0_44 = arith.constant 0 : index
    %104 = vector.load %arg2[%c9, %c0_44] : memref<34x32xf32, #tpu.memory_space<vmem>>, vector<1x32xf32>
    %105 = vector.broadcast %104 : vector<1x32xf32> to vector<8x32xf32>
    %106 = arith.addf %103, %105 : vector<8x32xf32>
    %cst_45 = arith.constant dense<0.000000e+00> : vector<32xf32>
    %107 = vector.multi_reduction <add>, %106, %cst_45 [0] : vector<8x32xf32> to vector<32xf32>
    %108 = vector.shape_cast %107 : vector<32xf32> to vector<1x32xf32>
    %cst_46 = arith.constant 8.000000e+00 : f32
    %109 = vector.broadcast %cst_46 : f32 to vector<1x32xf32>
    %110 = arith.divf %108, %109 : vector<1x32xf32>
    %111 = arith.mulf %106, %106 : vector<8x32xf32>
    %cst_47 = arith.constant dense<0.000000e+00> : vector<32xf32>
    %112 = vector.multi_reduction <add>, %111, %cst_47 [0] : vector<8x32xf32> to vector<32xf32>
    %113 = vector.shape_cast %112 : vector<32xf32> to vector<1x32xf32>
    %cst_48 = arith.constant 8.000000e+00 : f32
    %114 = vector.broadcast %cst_48 : f32 to vector<1x32xf32>
    %115 = arith.divf %113, %114 : vector<1x32xf32>
    %116 = arith.mulf %110, %110 : vector<1x32xf32>
    %117 = arith.subf %115, %116 : vector<1x32xf32>
    %cst_49 = arith.constant 1.000000e-03 : f32
    %118 = vector.broadcast %cst_49 : f32 to vector<1x32xf32>
    %119 = arith.addf %117, %118 : vector<1x32xf32>
    %120 = math.rsqrt %119 : vector<1x32xf32>
    %121 = vector.broadcast %110 : vector<1x32xf32> to vector<8x32xf32>
    %122 = arith.subf %106, %121 : vector<8x32xf32>
    %123 = vector.broadcast %120 : vector<1x32xf32> to vector<8x32xf32>
    %124 = arith.mulf %122, %123 : vector<8x32xf32>
    %c10 = arith.constant 10 : index
    %c0_50 = arith.constant 0 : index
    %125 = vector.load %arg2[%c10, %c0_50] : memref<34x32xf32, #tpu.memory_space<vmem>>, vector<1x32xf32>
    %126 = vector.broadcast %125 : vector<1x32xf32> to vector<8x32xf32>
    %127 = arith.mulf %124, %126 : vector<8x32xf32>
    %c11 = arith.constant 11 : index
    %c0_51 = arith.constant 0 : index
    %128 = vector.load %arg2[%c11, %c0_51] : memref<34x32xf32, #tpu.memory_space<vmem>>, vector<1x32xf32>
    %129 = vector.broadcast %128 : vector<1x32xf32> to vector<8x32xf32>
    %130 = arith.addf %127, %129 : vector<8x32xf32>
    %cst_52 = arith.constant 0.000000e+00 : f32
    %131 = vector.broadcast %cst_52 : f32 to vector<8x32xf32>
    %132 = arith.maximumf %130, %131 : vector<8x32xf32>
    %c4_53 = arith.constant 4 : index
    %c0_54 = arith.constant 0 : index
    %c0_55 = arith.constant 0 : index
    %133 = vector.load %arg1[%c4_53, %c0_54, %c0_55] : memref<15x32x32xf32, #tpu.memory_space<vmem>>, vector<1x32x32xf32>
    %134 = vector.shape_cast %133 : vector<1x32x32xf32> to vector<32x32xf32>
    %cst_56 = arith.constant dense<0.000000e+00> : vector<8x32xf32>
    %135 = tpu.matmul %132, %134, %cst_56 {dimension_numbers = #tpu.dot_dimension_numbers<[1], [0], [0], [1], [0, 0, 1, 1], [], []>} : vector<8x32xf32>, vector<32x32xf32>, vector<8x32xf32> -> vector<8x32xf32>
    %c12 = arith.constant 12 : index
    %c0_57 = arith.constant 0 : index
    %136 = vector.load %arg2[%c12, %c0_57] : memref<34x32xf32, #tpu.memory_space<vmem>>, vector<1x32xf32>
    %137 = vector.broadcast %136 : vector<1x32xf32> to vector<8x32xf32>
    %138 = arith.addf %135, %137 : vector<8x32xf32>
    %139 = arith.addf %74, %138 : vector<8x32xf32>
    %c5_58 = arith.constant 5 : index
    %c0_59 = arith.constant 0 : index
    %c0_60 = arith.constant 0 : index
    %140 = vector.load %arg1[%c5_58, %c0_59, %c0_60] : memref<15x32x32xf32, #tpu.memory_space<vmem>>, vector<1x32x32xf32>
    %141 = vector.shape_cast %140 : vector<1x32x32xf32> to vector<32x32xf32>
    %cst_61 = arith.constant dense<0.000000e+00> : vector<8x32xf32>
    %142 = tpu.matmul %139, %141, %cst_61 {dimension_numbers = #tpu.dot_dimension_numbers<[1], [0], [0], [1], [0, 0, 1, 1], [], []>} : vector<8x32xf32>, vector<32x32xf32>, vector<8x32xf32> -> vector<8x32xf32>
    %c13 = arith.constant 13 : index
    %c0_62 = arith.constant 0 : index
    %143 = vector.load %arg2[%c13, %c0_62] : memref<34x32xf32, #tpu.memory_space<vmem>>, vector<1x32xf32>
    %144 = vector.broadcast %143 : vector<1x32xf32> to vector<8x32xf32>
    %145 = arith.addf %142, %144 : vector<8x32xf32>
    %c6_63 = arith.constant 6 : index
    %c0_64 = arith.constant 0 : index
    %c0_65 = arith.constant 0 : index
    %146 = vector.load %arg1[%c6_63, %c0_64, %c0_65] : memref<15x32x32xf32, #tpu.memory_space<vmem>>, vector<1x32x32xf32>
    %147 = vector.shape_cast %146 : vector<1x32x32xf32> to vector<32x32xf32>
    %cst_66 = arith.constant dense<0.000000e+00> : vector<8x32xf32>
    %148 = tpu.matmul %139, %147, %cst_66 {dimension_numbers = #tpu.dot_dimension_numbers<[1], [0], [0], [1], [0, 0, 1, 1], [], []>} : vector<8x32xf32>, vector<32x32xf32>, vector<8x32xf32> -> vector<8x32xf32>
    %c14 = arith.constant 14 : index
    %c0_67 = arith.constant 0 : index
    %149 = vector.load %arg2[%c14, %c0_67] : memref<34x32xf32, #tpu.memory_space<vmem>>, vector<1x32xf32>
    %150 = vector.broadcast %149 : vector<1x32xf32> to vector<8x32xf32>
    %151 = arith.addf %148, %150 : vector<8x32xf32>
    %cst_68 = arith.constant 5.000000e-01 : f32
    %152 = vector.broadcast %cst_68 : f32 to vector<8x32xf32>
    %153 = arith.mulf %152, %151 : vector<8x32xf32>
    %154 = math.exp %153 : vector<8x32xf32>
    %155 = arith.mulf %2, %154 : vector<8x32xf32>
    %156 = arith.addf %145, %155 : vector<8x32xf32>
    %c13_69 = arith.constant 13 : index
    %c0_70 = arith.constant 0 : index
    %c0_71 = arith.constant 0 : index
    %157 = vector.load %arg1[%c13_69, %c0_70, %c0_71] : memref<15x32x32xf32, #tpu.memory_space<vmem>>, vector<1x32x32xf32>
    %158 = vector.shape_cast %157 : vector<1x32x32xf32> to vector<32x32xf32>
    %cst_72 = arith.constant dense<0.000000e+00> : vector<8x32xf32>
    %159 = tpu.matmul %156, %158, %cst_72 {dimension_numbers = #tpu.dot_dimension_numbers<[1], [0], [0], [1], [0, 0, 1, 1], [], []>} : vector<8x32xf32>, vector<32x32xf32>, vector<8x32xf32> -> vector<8x32xf32>
    %c29 = arith.constant 29 : index
    %c0_73 = arith.constant 0 : index
    %160 = vector.load %arg2[%c29, %c0_73] : memref<34x32xf32, #tpu.memory_space<vmem>>, vector<1x32xf32>
    %161 = vector.broadcast %3 : vector<8x1xf32> to vector<8x32xf32>
    %162 = vector.broadcast %160 : vector<1x32xf32> to vector<8x32xf32>
    %163 = arith.mulf %161, %162 : vector<8x32xf32>
    %164 = arith.addf %159, %163 : vector<8x32xf32>
    %c30 = arith.constant 30 : index
    %c0_74 = arith.constant 0 : index
    %165 = vector.load %arg2[%c30, %c0_74] : memref<34x32xf32, #tpu.memory_space<vmem>>, vector<1x32xf32>
    %166 = vector.broadcast %165 : vector<1x32xf32> to vector<8x32xf32>
    %167 = arith.addf %164, %166 : vector<8x32xf32>
    %cst_75 = arith.constant dense<0.000000e+00> : vector<32xf32>
    %168 = vector.multi_reduction <add>, %167, %cst_75 [0] : vector<8x32xf32> to vector<32xf32>
    %169 = vector.shape_cast %168 : vector<32xf32> to vector<1x32xf32>
    %cst_76 = arith.constant 8.000000e+00 : f32
    %170 = vector.broadcast %cst_76 : f32 to vector<1x32xf32>
    %171 = arith.divf %169, %170 : vector<1x32xf32>
    %172 = arith.mulf %167, %167 : vector<8x32xf32>
    %cst_77 = arith.constant dense<0.000000e+00> : vector<32xf32>
    %173 = vector.multi_reduction <add>, %172, %cst_77 [0] : vector<8x32xf32> to vector<32xf32>
    %174 = vector.shape_cast %173 : vector<32xf32> to vector<1x32xf32>
    %cst_78 = arith.constant 8.000000e+00 : f32
    %175 = vector.broadcast %cst_78 : f32 to vector<1x32xf32>
    %176 = arith.divf %174, %175 : vector<1x32xf32>
    %177 = arith.mulf %171, %171 : vector<1x32xf32>
    %178 = arith.subf %176, %177 : vector<1x32xf32>
    %cst_79 = arith.constant 1.000000e-03 : f32
    %179 = vector.broadcast %cst_79 : f32 to vector<1x32xf32>
    %180 = arith.addf %178, %179 : vector<1x32xf32>
    %181 = math.rsqrt %180 : vector<1x32xf32>
    %182 = vector.broadcast %171 : vector<1x32xf32> to vector<8x32xf32>
    %183 = arith.subf %167, %182 : vector<8x32xf32>
    %184 = vector.broadcast %181 : vector<1x32xf32> to vector<8x32xf32>
    %185 = arith.mulf %183, %184 : vector<8x32xf32>
    %c31 = arith.constant 31 : index
    %c0_80 = arith.constant 0 : index
    %186 = vector.load %arg2[%c31, %c0_80] : memref<34x32xf32, #tpu.memory_space<vmem>>, vector<1x32xf32>
    %187 = vector.broadcast %186 : vector<1x32xf32> to vector<8x32xf32>
    %188 = arith.mulf %185, %187 : vector<8x32xf32>
    %c32 = arith.constant 32 : index
    %c0_81 = arith.constant 0 : index
    %189 = vector.load %arg2[%c32, %c0_81] : memref<34x32xf32, #tpu.memory_space<vmem>>, vector<1x32xf32>
    %190 = vector.broadcast %189 : vector<1x32xf32> to vector<8x32xf32>
    %191 = arith.addf %188, %190 : vector<8x32xf32>
    %cst_82 = arith.constant 0.000000e+00 : f32
    %192 = vector.broadcast %cst_82 : f32 to vector<8x32xf32>
    %193 = arith.maximumf %191, %192 : vector<8x32xf32>
    %c14_83 = arith.constant 14 : index
    %c0_84 = arith.constant 0 : index
    %c0_85 = arith.constant 0 : index
    %194 = vector.load %arg1[%c14_83, %c0_84, %c0_85] : memref<15x32x32xf32, #tpu.memory_space<vmem>>, vector<1x32x32xf32>
    %195 = vector.shape_cast %194 : vector<1x32x32xf32> to vector<32x32xf32>
    %cst_86 = arith.constant dense<0.000000e+00> : vector<8x32xf32>
    %196 = tpu.matmul %193, %195, %cst_86 {dimension_numbers = #tpu.dot_dimension_numbers<[1], [0], [0], [1], [0, 0, 1, 1], [], []>} : vector<8x32xf32>, vector<32x32xf32>, vector<8x32xf32> -> vector<8x32xf32>
    %c33 = arith.constant 33 : index
    %c0_87 = arith.constant 0 : index
    %197 = vector.load %arg2[%c33, %c0_87] : memref<34x32xf32, #tpu.memory_space<vmem>>, vector<1x32xf32>
    %198 = vector.broadcast %197 : vector<1x32xf32> to vector<8x32xf32>
    %199 = arith.addf %196, %198 : vector<8x32xf32>
    %c7_88 = arith.constant 7 : index
    %c0_89 = arith.constant 0 : index
    %c0_90 = arith.constant 0 : index
    %200 = vector.load %arg1[%c7_88, %c0_89, %c0_90] : memref<15x32x32xf32, #tpu.memory_space<vmem>>, vector<1x32x32xf32>
    %201 = vector.shape_cast %200 : vector<1x32x32xf32> to vector<32x32xf32>
    %cst_91 = arith.constant dense<0.000000e+00> : vector<8x32xf32>
    %202 = tpu.matmul %156, %201, %cst_91 {dimension_numbers = #tpu.dot_dimension_numbers<[1], [0], [0], [1], [0, 0, 1, 1], [], []>} : vector<8x32xf32>, vector<32x32xf32>, vector<8x32xf32> -> vector<8x32xf32>
    %c15 = arith.constant 15 : index
    %c0_92 = arith.constant 0 : index
    %203 = vector.load %arg2[%c15, %c0_92] : memref<34x32xf32, #tpu.memory_space<vmem>>, vector<1x32xf32>
    %204 = vector.broadcast %203 : vector<1x32xf32> to vector<8x32xf32>
    %205 = arith.addf %202, %204 : vector<8x32xf32>
    %cst_93 = arith.constant dense<0.000000e+00> : vector<32xf32>
    %206 = vector.multi_reduction <add>, %205, %cst_93 [0] : vector<8x32xf32> to vector<32xf32>
    %207 = vector.shape_cast %206 : vector<32xf32> to vector<1x32xf32>
    %cst_94 = arith.constant 8.000000e+00 : f32
    %208 = vector.broadcast %cst_94 : f32 to vector<1x32xf32>
    %209 = arith.divf %207, %208 : vector<1x32xf32>
    %210 = arith.mulf %205, %205 : vector<8x32xf32>
    %cst_95 = arith.constant dense<0.000000e+00> : vector<32xf32>
    %211 = vector.multi_reduction <add>, %210, %cst_95 [0] : vector<8x32xf32> to vector<32xf32>
    %212 = vector.shape_cast %211 : vector<32xf32> to vector<1x32xf32>
    %cst_96 = arith.constant 8.000000e+00 : f32
    %213 = vector.broadcast %cst_96 : f32 to vector<1x32xf32>
    %214 = arith.divf %212, %213 : vector<1x32xf32>
    %215 = arith.mulf %209, %209 : vector<1x32xf32>
    %216 = arith.subf %214, %215 : vector<1x32xf32>
    %cst_97 = arith.constant 1.000000e-03 : f32
    %217 = vector.broadcast %cst_97 : f32 to vector<1x32xf32>
    %218 = arith.addf %216, %217 : vector<1x32xf32>
    %219 = math.rsqrt %218 : vector<1x32xf32>
    %220 = vector.broadcast %209 : vector<1x32xf32> to vector<8x32xf32>
    %221 = arith.subf %205, %220 : vector<8x32xf32>
    %222 = vector.broadcast %219 : vector<1x32xf32> to vector<8x32xf32>
    %223 = arith.mulf %221, %222 : vector<8x32xf32>
    %c16 = arith.constant 16 : index
    %c0_98 = arith.constant 0 : index
    %224 = vector.load %arg2[%c16, %c0_98] : memref<34x32xf32, #tpu.memory_space<vmem>>, vector<1x32xf32>
    %225 = vector.broadcast %224 : vector<1x32xf32> to vector<8x32xf32>
    %226 = arith.mulf %223, %225 : vector<8x32xf32>
    %c17 = arith.constant 17 : index
    %c0_99 = arith.constant 0 : index
    %227 = vector.load %arg2[%c17, %c0_99] : memref<34x32xf32, #tpu.memory_space<vmem>>, vector<1x32xf32>
    %228 = vector.broadcast %227 : vector<1x32xf32> to vector<8x32xf32>
    %229 = arith.addf %226, %228 : vector<8x32xf32>
    %cst_100 = arith.constant 0.000000e+00 : f32
    %230 = vector.broadcast %cst_100 : f32 to vector<8x32xf32>
    %231 = arith.maximumf %229, %230 : vector<8x32xf32>
    %c8_101 = arith.constant 8 : index
    %c0_102 = arith.constant 0 : index
    %c0_103 = arith.constant 0 : index
    %232 = vector.load %arg1[%c8_101, %c0_102, %c0_103] : memref<15x32x32xf32, #tpu.memory_space<vmem>>, vector<1x32x32xf32>
    %233 = vector.shape_cast %232 : vector<1x32x32xf32> to vector<32x32xf32>
    %cst_104 = arith.constant dense<0.000000e+00> : vector<8x32xf32>
    %234 = tpu.matmul %231, %233, %cst_104 {dimension_numbers = #tpu.dot_dimension_numbers<[1], [0], [0], [1], [0, 0, 1, 1], [], []>} : vector<8x32xf32>, vector<32x32xf32>, vector<8x32xf32> -> vector<8x32xf32>
    %c18 = arith.constant 18 : index
    %c0_105 = arith.constant 0 : index
    %235 = vector.load %arg2[%c18, %c0_105] : memref<34x32xf32, #tpu.memory_space<vmem>>, vector<1x32xf32>
    %236 = vector.broadcast %235 : vector<1x32xf32> to vector<8x32xf32>
    %237 = arith.addf %234, %236 : vector<8x32xf32>
    %cst_106 = arith.constant dense<0.000000e+00> : vector<32xf32>
    %238 = vector.multi_reduction <add>, %237, %cst_106 [0] : vector<8x32xf32> to vector<32xf32>
    %239 = vector.shape_cast %238 : vector<32xf32> to vector<1x32xf32>
    %cst_107 = arith.constant 8.000000e+00 : f32
    %240 = vector.broadcast %cst_107 : f32 to vector<1x32xf32>
    %241 = arith.divf %239, %240 : vector<1x32xf32>
    %242 = arith.mulf %237, %237 : vector<8x32xf32>
    %cst_108 = arith.constant dense<0.000000e+00> : vector<32xf32>
    %243 = vector.multi_reduction <add>, %242, %cst_108 [0] : vector<8x32xf32> to vector<32xf32>
    %244 = vector.shape_cast %243 : vector<32xf32> to vector<1x32xf32>
    %cst_109 = arith.constant 8.000000e+00 : f32
    %245 = vector.broadcast %cst_109 : f32 to vector<1x32xf32>
    %246 = arith.divf %244, %245 : vector<1x32xf32>
    %247 = arith.mulf %241, %241 : vector<1x32xf32>
    %248 = arith.subf %246, %247 : vector<1x32xf32>
    %cst_110 = arith.constant 1.000000e-03 : f32
    %249 = vector.broadcast %cst_110 : f32 to vector<1x32xf32>
    %250 = arith.addf %248, %249 : vector<1x32xf32>
    %251 = math.rsqrt %250 : vector<1x32xf32>
    %252 = vector.broadcast %241 : vector<1x32xf32> to vector<8x32xf32>
    %253 = arith.subf %237, %252 : vector<8x32xf32>
    %254 = vector.broadcast %251 : vector<1x32xf32> to vector<8x32xf32>
    %255 = arith.mulf %253, %254 : vector<8x32xf32>
    %c19 = arith.constant 19 : index
    %c0_111 = arith.constant 0 : index
    %256 = vector.load %arg2[%c19, %c0_111] : memref<34x32xf32, #tpu.memory_space<vmem>>, vector<1x32xf32>
    %257 = vector.broadcast %256 : vector<1x32xf32> to vector<8x32xf32>
    %258 = arith.mulf %255, %257 : vector<8x32xf32>
    %c20 = arith.constant 20 : index
    %c0_112 = arith.constant 0 : index
    %259 = vector.load %arg2[%c20, %c0_112] : memref<34x32xf32, #tpu.memory_space<vmem>>, vector<1x32xf32>
    %260 = vector.broadcast %259 : vector<1x32xf32> to vector<8x32xf32>
    %261 = arith.addf %258, %260 : vector<8x32xf32>
    %cst_113 = arith.constant 0.000000e+00 : f32
    %262 = vector.broadcast %cst_113 : f32 to vector<8x32xf32>
    %263 = arith.maximumf %261, %262 : vector<8x32xf32>
    %c9_114 = arith.constant 9 : index
    %c0_115 = arith.constant 0 : index
    %c0_116 = arith.constant 0 : index
    %264 = vector.load %arg1[%c9_114, %c0_115, %c0_116] : memref<15x32x32xf32, #tpu.memory_space<vmem>>, vector<1x32x32xf32>
    %265 = vector.shape_cast %264 : vector<1x32x32xf32> to vector<32x32xf32>
    %cst_117 = arith.constant dense<0.000000e+00> : vector<8x32xf32>
    %266 = tpu.matmul %263, %265, %cst_117 {dimension_numbers = #tpu.dot_dimension_numbers<[1], [0], [0], [1], [0, 0, 1, 1], [], []>} : vector<8x32xf32>, vector<32x32xf32>, vector<8x32xf32> -> vector<8x32xf32>
    %c21 = arith.constant 21 : index
    %c0_118 = arith.constant 0 : index
    %267 = vector.load %arg2[%c21, %c0_118] : memref<34x32xf32, #tpu.memory_space<vmem>>, vector<1x32xf32>
    %268 = vector.broadcast %267 : vector<1x32xf32> to vector<8x32xf32>
    %269 = arith.addf %266, %268 : vector<8x32xf32>
    %270 = arith.addf %205, %269 : vector<8x32xf32>
    %cst_119 = arith.constant dense<0.000000e+00> : vector<32xf32>
    %271 = vector.multi_reduction <add>, %270, %cst_119 [0] : vector<8x32xf32> to vector<32xf32>
    %272 = vector.shape_cast %271 : vector<32xf32> to vector<1x32xf32>
    %cst_120 = arith.constant 8.000000e+00 : f32
    %273 = vector.broadcast %cst_120 : f32 to vector<1x32xf32>
    %274 = arith.divf %272, %273 : vector<1x32xf32>
    %275 = arith.mulf %270, %270 : vector<8x32xf32>
    %cst_121 = arith.constant dense<0.000000e+00> : vector<32xf32>
    %276 = vector.multi_reduction <add>, %275, %cst_121 [0] : vector<8x32xf32> to vector<32xf32>
    %277 = vector.shape_cast %276 : vector<32xf32> to vector<1x32xf32>
    %cst_122 = arith.constant 8.000000e+00 : f32
    %278 = vector.broadcast %cst_122 : f32 to vector<1x32xf32>
    %279 = arith.divf %277, %278 : vector<1x32xf32>
    %280 = arith.mulf %274, %274 : vector<1x32xf32>
    %281 = arith.subf %279, %280 : vector<1x32xf32>
    %cst_123 = arith.constant 1.000000e-03 : f32
    %282 = vector.broadcast %cst_123 : f32 to vector<1x32xf32>
    %283 = arith.addf %281, %282 : vector<1x32xf32>
    %284 = math.rsqrt %283 : vector<1x32xf32>
    %285 = vector.broadcast %274 : vector<1x32xf32> to vector<8x32xf32>
    %286 = arith.subf %270, %285 : vector<8x32xf32>
    %287 = vector.broadcast %284 : vector<1x32xf32> to vector<8x32xf32>
    %288 = arith.mulf %286, %287 : vector<8x32xf32>
    %c22 = arith.constant 22 : index
    %c0_124 = arith.constant 0 : index
    %289 = vector.load %arg2[%c22, %c0_124] : memref<34x32xf32, #tpu.memory_space<vmem>>, vector<1x32xf32>
    %290 = vector.broadcast %289 : vector<1x32xf32> to vector<8x32xf32>
    %291 = arith.mulf %288, %290 : vector<8x32xf32>
    %c23 = arith.constant 23 : index
    %c0_125 = arith.constant 0 : index
    %292 = vector.load %arg2[%c23, %c0_125] : memref<34x32xf32, #tpu.memory_space<vmem>>, vector<1x32xf32>
    %293 = vector.broadcast %292 : vector<1x32xf32> to vector<8x32xf32>
    %294 = arith.addf %291, %293 : vector<8x32xf32>
    %cst_126 = arith.constant 0.000000e+00 : f32
    %295 = vector.broadcast %cst_126 : f32 to vector<8x32xf32>
    %296 = arith.maximumf %294, %295 : vector<8x32xf32>
    %c10_127 = arith.constant 10 : index
    %c0_128 = arith.constant 0 : index
    %c0_129 = arith.constant 0 : index
    %297 = vector.load %arg1[%c10_127, %c0_128, %c0_129] : memref<15x32x32xf32, #tpu.memory_space<vmem>>, vector<1x32x32xf32>
    %298 = vector.shape_cast %297 : vector<1x32x32xf32> to vector<32x32xf32>
    %cst_130 = arith.constant dense<0.000000e+00> : vector<8x32xf32>
    %299 = tpu.matmul %296, %298, %cst_130 {dimension_numbers = #tpu.dot_dimension_numbers<[1], [0], [0], [1], [0, 0, 1, 1], [], []>} : vector<8x32xf32>, vector<32x32xf32>, vector<8x32xf32> -> vector<8x32xf32>
    %c24 = arith.constant 24 : index
    %c0_131 = arith.constant 0 : index
    %300 = vector.load %arg2[%c24, %c0_131] : memref<34x32xf32, #tpu.memory_space<vmem>>, vector<1x32xf32>
    %301 = vector.broadcast %300 : vector<1x32xf32> to vector<8x32xf32>
    %302 = arith.addf %299, %301 : vector<8x32xf32>
    %cst_132 = arith.constant dense<0.000000e+00> : vector<32xf32>
    %303 = vector.multi_reduction <add>, %302, %cst_132 [0] : vector<8x32xf32> to vector<32xf32>
    %304 = vector.shape_cast %303 : vector<32xf32> to vector<1x32xf32>
    %cst_133 = arith.constant 8.000000e+00 : f32
    %305 = vector.broadcast %cst_133 : f32 to vector<1x32xf32>
    %306 = arith.divf %304, %305 : vector<1x32xf32>
    %307 = arith.mulf %302, %302 : vector<8x32xf32>
    %cst_134 = arith.constant dense<0.000000e+00> : vector<32xf32>
    %308 = vector.multi_reduction <add>, %307, %cst_134 [0] : vector<8x32xf32> to vector<32xf32>
    %309 = vector.shape_cast %308 : vector<32xf32> to vector<1x32xf32>
    %cst_135 = arith.constant 8.000000e+00 : f32
    %310 = vector.broadcast %cst_135 : f32 to vector<1x32xf32>
    %311 = arith.divf %309, %310 : vector<1x32xf32>
    %312 = arith.mulf %306, %306 : vector<1x32xf32>
    %313 = arith.subf %311, %312 : vector<1x32xf32>
    %cst_136 = arith.constant 1.000000e-03 : f32
    %314 = vector.broadcast %cst_136 : f32 to vector<1x32xf32>
    %315 = arith.addf %313, %314 : vector<1x32xf32>
    %316 = math.rsqrt %315 : vector<1x32xf32>
    %317 = vector.broadcast %306 : vector<1x32xf32> to vector<8x32xf32>
    %318 = arith.subf %302, %317 : vector<8x32xf32>
    %319 = vector.broadcast %316 : vector<1x32xf32> to vector<8x32xf32>
    %320 = arith.mulf %318, %319 : vector<8x32xf32>
    %c25 = arith.constant 25 : index
    %c0_137 = arith.constant 0 : index
    %321 = vector.load %arg2[%c25, %c0_137] : memref<34x32xf32, #tpu.memory_space<vmem>>, vector<1x32xf32>
    %322 = vector.broadcast %321 : vector<1x32xf32> to vector<8x32xf32>
    %323 = arith.mulf %320, %322 : vector<8x32xf32>
    %c26 = arith.constant 26 : index
    %c0_138 = arith.constant 0 : index
    %324 = vector.load %arg2[%c26, %c0_138] : memref<34x32xf32, #tpu.memory_space<vmem>>, vector<1x32xf32>
    %325 = vector.broadcast %324 : vector<1x32xf32> to vector<8x32xf32>
    %326 = arith.addf %323, %325 : vector<8x32xf32>
    %cst_139 = arith.constant 0.000000e+00 : f32
    %327 = vector.broadcast %cst_139 : f32 to vector<8x32xf32>
    %328 = arith.maximumf %326, %327 : vector<8x32xf32>
    %c11_140 = arith.constant 11 : index
    %c0_141 = arith.constant 0 : index
    %c0_142 = arith.constant 0 : index
    %329 = vector.load %arg1[%c11_140, %c0_141, %c0_142] : memref<15x32x32xf32, #tpu.memory_space<vmem>>, vector<1x32x32xf32>
    %330 = vector.shape_cast %329 : vector<1x32x32xf32> to vector<32x32xf32>
    %cst_143 = arith.constant dense<0.000000e+00> : vector<8x32xf32>
    %331 = tpu.matmul %328, %330, %cst_143 {dimension_numbers = #tpu.dot_dimension_numbers<[1], [0], [0], [1], [0, 0, 1, 1], [], []>} : vector<8x32xf32>, vector<32x32xf32>, vector<8x32xf32> -> vector<8x32xf32>
    %c27 = arith.constant 27 : index
    %c0_144 = arith.constant 0 : index
    %332 = vector.load %arg2[%c27, %c0_144] : memref<34x32xf32, #tpu.memory_space<vmem>>, vector<1x32xf32>
    %333 = vector.broadcast %332 : vector<1x32xf32> to vector<8x32xf32>
    %334 = arith.addf %331, %333 : vector<8x32xf32>
    %335 = arith.addf %270, %334 : vector<8x32xf32>
    %c12_145 = arith.constant 12 : index
    %c0_146 = arith.constant 0 : index
    %c0_147 = arith.constant 0 : index
    %336 = vector.load %arg1[%c12_145, %c0_146, %c0_147] : memref<15x32x32xf32, #tpu.memory_space<vmem>>, vector<1x32x32xf32>
    %337 = vector.shape_cast %336 : vector<1x32x32xf32> to vector<32x32xf32>
    %cst_148 = arith.constant dense<0.000000e+00> : vector<8x32xf32>
    %338 = tpu.matmul %335, %337, %cst_148 {dimension_numbers = #tpu.dot_dimension_numbers<[1], [0], [0], [1], [0, 0, 1, 1], [], []>} : vector<8x32xf32>, vector<32x32xf32>, vector<8x32xf32> -> vector<8x32xf32>
    %c28 = arith.constant 28 : index
    %c0_149 = arith.constant 0 : index
    %339 = vector.load %arg2[%c28, %c0_149] : memref<34x32xf32, #tpu.memory_space<vmem>>, vector<1x32xf32>
    %340 = vector.broadcast %339 : vector<1x32xf32> to vector<8x32xf32>
    %341 = arith.addf %338, %340 : vector<8x32xf32>
    %342 = tpu.concatenate %199, %341, %145, %151 in 1 : vector<8x32xf32>, vector<8x32xf32>, vector<8x32xf32>, vector<8x32xf32> -> vector<8x128xf32>
    %c0_150 = arith.constant 0 : index
    %c0_151 = arith.constant 0 : index
    %343 = vector.load %arg3[%c0_150, %c0_151] : memref<8x128xf32, #tpu.memory_space<vmem>>, vector<8x128xf32>
    tpu.vector_store %arg3[%c0_150, %c0_151], %342 {strides = array<i32>} : memref<8x128xf32, #tpu.memory_space<vmem>>, vector<8x128xf32>,
    return
  }
}

</mosaic_0001>

<bundles_post_ra>
// kernel: tpu_custom_call.1
= control target key start
LH: loop header
LB: loop body
LE: loop exit
PB: predicated region body
PF: predicated region fallthrough
CT: control target
= control target key end

     0   :  { %8 = vsyncpa [#allocation3], 0  ;;  %s1266_s0 = inlined_call_operand.vmem [shape: f32[8,128], index: 0, kind: input, shape index: {}]   ;;  %s1267_s1 = inlined_call_operand.hbm [shape: f32[15,32,32], index: 1, kind: input, shape index: {}]   ;;  %s1268_s2 = inlined_call_operand.vmem [shape: f32[34,32], index: 2, kind: input, shape index: {}]   ;;  %s1269_s3 = inlined_call_operand.hbm [shape: f32[8,128], index: 3, kind: output, shape index: {}]  }
   0x1   :  { %9 = vsyncpa [#allocation4], 0  ;;  %s16_s14 = sshll.u32 %s1267_s1, 4  ;;  %s1028_s15 = smov [#allocation2]   ;;  %s17_s14 = int_to_ptr.hbm [resolvable:$true] %s16_s14 }
   0x2   :  { %s18_s16 = sshll.u32 %s1028_s15, 4  ;;  %s1029_s17 = smov 128   ;;  %s19_s16 = int_to_ptr.vmem [resolvable:$true] %s18_s16 }
   0x3   :  { %s1030_s18 = smov 8  }
   0x4   :  { %24 = dma.hbm_to_vmem [thread:$0]  %s17_s14, 7680, %s19_s16, [#allocation3], %s1029_s17, %s1029_s17, %s1030_s18  }
   0x5   :  { %1024 = dma.done.wait [#allocation3], 7680  }
   0x6   :  { %1025 = vsyncadd [#allocation3], 4294959616  ;;  %v35_v0 = vld [vmem:[#allocation2 + $0x18] sm:$0xff]  ;;  %v34_v1 = vld [vmem:[#allocation2 + $0x10] sm:$0xff]  ;;  %vm38_vm0 = vcmask 261120   ;;  %v1031_v5 = vmov 8.0  }
   0x7   :  { %54 = vmatpush.msra.mxu0 %v35_v0  ;;  %v33_v2 = vld [vmem:[#allocation2 + $0x8] sm:$0xff]  ;;  %v32_v3 = vld [vmem:[#allocation2] sm:$0xff]  ;;  %954 = vrcp.f32 %v1031_v5  ;;  %v112_v6 = vld [vmem:[#allocation2 + $0x38] sm:$0xff]  ;;  %s1032_s20 = smov 64   ;;  %s1034_s22 = smov 32  }
   0x8   :  { %v1063_v4 = vld [vmem:[%s1266_s0] sm:$0xff]  ;;  %v111_v7 = vld [vmem:[#allocation2 + $0x30] sm:$0xff]  ;;  %130 = vmatpush.msra.mxu1 %v112_v6  ;;  %v110_v9 = vld [vmem:[#allocation2 + $0x28] sm:$0xff]  ;;  %s1033_s0 = smov 96   ;;  %s1036_s6 = smov [#allocation5]  }
   0x9   :  { %55 = vmatpush.msra.mxu0 %v34_v1  ;;  %v109_v10 = vld [vmem:[#allocation2 + $0x20] sm:$0xff]  ;;  %s882_s7 = sshll.u32 %s1036_s6, 4  ;;  %s884_s10 = sshll.u32 %s1269_s3, 4  ;;  %s883_s7 = int_to_ptr.vmem [resolvable:$true] %s882_s7  ;;  %s885_s10 = int_to_ptr.hbm [resolvable:$true] %s884_s10 }
   0xa   :  { %131 = vmatpush.msra.mxu1 %v111_v7  ;;  %v920_v11 = vld [vmem:[%s1268_s2] ss:$0 sm:$0xff]  ;;  %v921_v46 = vld [vmem:[%s1268_s2 + $0x1] ss:$0 sm:$0xff]  ;;  %v922_v49 = vld [vmem:[%s1268_s2 + $0x2] ss:$0 sm:$0xff] }
   0xb   :  { %56 = vmatpush.msra.mxu0 %v33_v2  ;;  %v923_v53 = vld [vmem:[%s1268_s2 + $0x3] ss:$0 sm:$0xff]  ;;  %v181_v2 = vld [vmem:[#allocation2 + $0x58] sm:$0xff]  ;;  %v179_v7 = vld [vmem:[#allocation2 + $0x48] sm:$0xff] }
   0xc   :  { %132 = vmatpush.msra.mxu1 %v110_v9  ;;  %199 = vmatpush.msra.mxu2 %v181_v2 }
   0xd   :  { %57 = vmatpush.msra.mxu0 %v32_v3  ;;  %v955_v8 = vpop.eup %954  ;;  %v180_v3 = vld [vmem:[#allocation2 + $0x50] sm:$0xff] }
   0xe   :  { %894 = vmatmul.msk.f32.vlgmr.msra.gmra.mxu0 %vm38_vm0, %v1063_v4  ;;  %v70_v12 = vmul.f32 8.0, %v955_v8  ;;  %133 = vmatpush.msra.mxu1 %v109_v10  ;;  %vm74_vm1 = vweird.f32 %v955_v8  ;;  %v178_v10 = vld [vmem:[#allocation2 + $0x40] sm:$0xff] }
   0xf   :  { %200 = vmatpush.msra.mxu2 %v180_v3  ;;  %v927_v3 = vld [vmem:[%s1268_s2 + $0x7] ss:$0 sm:$0xff] }
  0x10   :  { %v71_v15 = vsub.f32 1.0, %v70_v12 }
  0x11   :  { %201 = vmatpush.msra.mxu2 %v179_v7  ;;  %v928_v7 = vld [vmem:[%s1268_s2 + $0x8] ss:$0 sm:$0xff] }
  0x12   :  { %v72_v19 = vmul.f32 %v955_v8, %v71_v15 }
  0x13   :  { %202 = vmatpush.msra.mxu2 %v178_v10 }
  0x14   :  { %v73_v25 = vadd.f32 %v955_v8, %v72_v19 }
  0x16   :  { %v1077_v30 = vsel %vm74_vm1, %v955_v8, %v73_v25  ;;  %v924_v25 = vld [vmem:[%s1268_s2 + $0x4] ss:$0 sm:$0xff] }
  0x8b   :  { %v59_v13 = vpop.f32.mrf.mxu0 }
  0x8c   :  { %v1070_v14 = vadd.f32 %v920_v11, %v59_v13 }
  0x8e   :  { %v62_v16 = vsel %vm38_vm0, %v1070_v14, 0.0  ;;  %v77_v17 = vmul.f32 %v1070_v14, %v1070_v14 }
  0x8f   :  { %v63_v18 = vrot.slane %v62_v16, 4 }
  0x90   :  { %v78_v20 = vsel %vm38_vm0, %v77_v17, 0.0 }
  0x91   :  { %v64_v21 = vadd.f32 %v63_v18, %v62_v16  ;;  %v79_v22 = vrot.slane %v78_v20, 4 }
  0x93   :  { %v65_v23 = vrot.slane %v64_v21, 2  ;;  %v80_v24 = vadd.f32 %v79_v22, %v78_v20 }
  0x95   :  { %v66_v26 = vadd.f32 %v65_v23, %v64_v21  ;;  %v81_v27 = vrot.slane %v80_v24, 2 }
  0x97   :  { %v67_v28 = vrot.slane %v66_v26, 1  ;;  %v82_v29 = vadd.f32 %v81_v27, %v80_v24 }
  0x99   :  { %v68_v31 = vadd.f32 %v67_v28, %v66_v26  ;;  %v83_v32 = vrot.slane %v82_v29, 1  ;;  %v925_v28 = vld [vmem:[%s1268_s2 + $0x5] ss:$0 sm:$0xff] }
  0x9b   :  { %v76_v33 = vmul.f32 %v1077_v30, %v68_v31  ;;  %v84_v34 = vadd.f32 %v83_v32, %v82_v29 }
  0x9d   :  { %v85_v35 = vmul.f32 %v84_v34, %v1077_v30  ;;  %v86_v36 = vmul.f32 %v76_v33, %v76_v33  ;;  %v99_v45 = vsub.f32 %v1070_v14, %v76_v33  ;;  %v251_v33 = vld [vmem:[#allocation2 + $0x78] sm:$0xff]  ;;  %v250_v34 = vld [vmem:[#allocation2 + $0x70] sm:$0xff] }
  0x9e   :  { %269 = vmatpush.msra.mxu3 %v251_v33  ;;  %v317_v33 = vld [vmem:[#allocation2 + $0x80] sm:$0xff] }
  0x9f   :  { %v87_v37 = vsub.f32 %v85_v35, %v86_v36  ;;  %v249_v35 = vld [vmem:[#allocation2 + $0x68] sm:$0xff]  ;;  %v248_v36 = vld [vmem:[#allocation2 + $0x60] sm:$0xff] }
  0xa0   :  { %270 = vmatpush.msra.mxu3 %v250_v34 }
  0xa1   :  { %v88_v38 = vadd.f32 0.001, %v87_v37  ;;  %v926_v37 = vld [vmem:[%s1268_s2 + $0x6] ss:$0 sm:$0xff] }
  0xa2   :  { %271 = vmatpush.msra.mxu3 %v249_v35 }
  0xa3   :  { %956 = vrsqrt.f32 %v88_v38  ;;  %vm95_vm3 = vweird.f32 %v88_v38 }
  0xa4   :  { %272 = vmatpush.msra.mxu3 %v248_v36 }
  0xa9   :  { %v957_v39 = vpop.eup %956 }
  0xaa   :  { %v90_v40 = vmul.f32 %v957_v39, %v88_v38  ;;  %vm96_vm2 = vweird.f32 %v957_v39 }
  0xab   :  { %vm97_vm4 = vmor %vm95_vm3, %vm96_vm2 }
  0xac   :  { %v91_v41 = vmul.f32 %v957_v39, %v90_v40 }
  0xae   :  { %v92_v42 = vmul.f32 0.5, %v91_v41 }
  0xb0   :  { %v93_v43 = vsub.f32 1.5, %v92_v42 }
  0xb2   :  { %v94_v44 = vmul.f32 %v957_v39, %v93_v43 }
  0xb4   :  { %v98_v47 = vsel %vm97_vm4, %v957_v39, %v94_v44 }
  0xb5   :  { %v100_v48 = vmul.f32 %v99_v45, %v98_v47 }
  0xb7   :  { %v103_v50 = vmul.f32 %v921_v46, %v100_v48 }
  0xb9   :  { %v106_v51 = vadd.f32 %v922_v49, %v103_v50 }
  0xbb   :  { %v107_v52 = vmax.f32 %v106_v51, 0.0 }
  0xbd   :  { %895 = vmatmul.msk.f32.vlgmr.msra.gmra.mxu1 %vm38_vm0, %v107_v52 }
 0x13a   :  { %v135_v54 = vpop.f32.mrf.mxu1 }
 0x13b   :  { %v136_v55 = vadd.f32 %v923_v53, %v135_v54 }
 0x13d   :  { %v138_v56 = vsel %vm38_vm0, %v136_v55, 0.0  ;;  %v146_v57 = vmul.f32 %v136_v55, %v136_v55 }
 0x13e   :  { %v139_v58 = vrot.slane %v138_v56, 4 }
 0x13f   :  { %v147_v59 = vsel %vm38_vm0, %v146_v57, 0.0 }
 0x140   :  { %v140_v60 = vadd.f32 %v139_v58, %v138_v56  ;;  %v148_v61 = vrot.slane %v147_v59, 4 }
 0x142   :  { %v141_v62 = vrot.slane %v140_v60, 2  ;;  %v149_v63 = vadd.f32 %v148_v61, %v147_v59 }
 0x144   :  { %v142_v0 = vadd.f32 %v141_v62, %v140_v60  ;;  %v150_v1 = vrot.slane %v149_v63, 2 }
 0x146   :  { %v143_v5 = vrot.slane %v142_v0, 1  ;;  %v151_v6 = vadd.f32 %v150_v1, %v149_v63 }
 0x148   :  { %v144_v8 = vadd.f32 %v143_v5, %v142_v0  ;;  %v152_v9 = vrot.slane %v151_v6, 1 }
 0x14a   :  { %v145_v11 = vmul.f32 %v144_v8, %v1077_v30  ;;  %v153_v12 = vadd.f32 %v152_v9, %v151_v6 }
 0x14c   :  { %v154_v13 = vmul.f32 %v153_v12, %v1077_v30  ;;  %v155_v15 = vmul.f32 %v145_v11, %v145_v11  ;;  %v168_v24 = vsub.f32 %v136_v55, %v145_v11  ;;  %v929_v11 = vld [vmem:[%s1268_s2 + $0x9] ss:$0 sm:$0xff] }
 0x14e   :  { %v156_v16 = vsub.f32 %v154_v13, %v155_v15 }
 0x150   :  { %v157_v17 = vadd.f32 0.001, %v156_v16 }
 0x152   :  { %958 = vrsqrt.f32 %v157_v17  ;;  %vm164_vm6 = vweird.f32 %v157_v17 }
 0x158   :  { %v959_v18 = vpop.eup %958 }
 0x159   :  { %v159_v19 = vmul.f32 %v959_v18, %v157_v17  ;;  %vm165_vm5 = vweird.f32 %v959_v18 }
 0x15a   :  { %vm166_vm7 = vmor %vm164_vm6, %vm165_vm5 }
 0x15b   :  { %v160_v20 = vmul.f32 %v959_v18, %v159_v19 }
 0x15d   :  { %v161_v21 = vmul.f32 0.5, %v160_v20 }
 0x15f   :  { %v162_v22 = vsub.f32 1.5, %v161_v21 }
 0x161   :  { %v163_v23 = vmul.f32 %v959_v18, %v162_v22 }
 0x163   :  { %v167_v26 = vsel %vm166_vm7, %v959_v18, %v163_v23 }
 0x164   :  { %v169_v27 = vmul.f32 %v168_v24, %v167_v26 }
 0x166   :  { %v172_v29 = vmul.f32 %v924_v25, %v169_v27  ;;  %v320_v25 = vld [vmem:[#allocation2 + $0x98] sm:$0xff] }
 0x167   :  { %338 = vmatpush.msrb.mxu0 %v320_v25  ;;  %v935_v25 = vld [vmem:[%s1268_s2 + $0xf] ss:$0 sm:$0xff] }
 0x168   :  { %v175_v31 = vadd.f32 %v925_v28, %v172_v29  ;;  %v319_v28 = vld [vmem:[#allocation2 + $0x90] sm:$0xff]  ;;  %v318_v29 = vld [vmem:[#allocation2 + $0x88] sm:$0xff] }
 0x169   :  { %339 = vmatpush.msrb.mxu0 %v319_v28 }
 0x16a   :  { %v176_v32 = vmax.f32 %v175_v31, 0.0 }
 0x16b   :  { %340 = vmatpush.msrb.mxu0 %v318_v29 }
 0x16c   :  { %896 = vmatmul.msk.f32.vlgmr.msra.gmra.mxu2 %vm38_vm0, %v176_v32 }
 0x16d   :  { %341 = vmatpush.msrb.mxu0 %v317_v33 }
 0x1ef   :  { %v204_v38 = vpop.f32.mrf.mxu2 }
 0x1f0   :  { %v205_v39 = vadd.f32 %v926_v37, %v204_v38  ;;  %v381_v38 = vld [vmem:[#allocation2 + $0xd8] sm:$0xff] }
 0x1f1   :  { %396 = vmatpush.msrb.mxu2 %v381_v38 }
 0x1f2   :  { %v1107_v40 = vadd.f32 %v205_v39, %v1070_v14  ;;  %v351_v39 = vld [vmem:[#allocation2 + $0xb8] sm:$0xff] }
 0x1f3   :  { %369 = vmatpush.msrb.mxu1 %v351_v39 }
 0x1f4   :  { %v208_v41 = vsel %vm38_vm0, %v1107_v40, 0.0  ;;  %v216_v42 = vmul.f32 %v1107_v40, %v1107_v40 }
 0x1f5   :  { %v209_v43 = vrot.slane %v208_v41, 4 }
 0x1f6   :  { %v217_v44 = vsel %vm38_vm0, %v216_v42, 0.0 }
 0x1f7   :  { %v210_v45 = vadd.f32 %v209_v43, %v208_v41  ;;  %v218_v46 = vrot.slane %v217_v44, 4  ;;  %v380_v41 = vld [vmem:[#allocation2 + $0xd0] sm:$0xff] }
 0x1f8   :  { %397 = vmatpush.msrb.mxu2 %v380_v41 }
 0x1f9   :  { %v211_v47 = vrot.slane %v210_v45, 2  ;;  %v219_v48 = vadd.f32 %v218_v46, %v217_v44 }
 0x1fb   :  { %v212_v49 = vadd.f32 %v211_v47, %v210_v45  ;;  %v220_v50 = vrot.slane %v219_v48, 2 }
 0x1fd   :  { %v213_v51 = vrot.slane %v212_v49, 1  ;;  %v221_v52 = vadd.f32 %v220_v50, %v219_v48 }
 0x1ff   :  { %v222_v53 = vrot.slane %v221_v52, 1  ;;  %v214_v14 = vadd.f32 %v213_v51, %v212_v49  ;;  %v930_v51 = vld [vmem:[%s1268_s2 + $0xa] ss:$0 sm:$0xff] }
 0x201   :  { %v223_v54 = vadd.f32 %v222_v53, %v221_v52  ;;  %v215_v55 = vmul.f32 %v214_v14, %v1077_v30  ;;  %v931_v14 = vld [vmem:[%s1268_s2 + $0xb] ss:$0 sm:$0xff] }
 0x203   :  { %v224_v56 = vmul.f32 %v223_v54, %v1077_v30  ;;  %v225_v57 = vmul.f32 %v215_v55, %v215_v55  ;;  %v238_v2 = vsub.f32 %v1107_v40, %v215_v55 }
 0x205   :  { %v226_v58 = vsub.f32 %v224_v56, %v225_v57  ;;  %v350_v57 = vld [vmem:[#allocation2 + $0xb0] sm:$0xff] }
 0x206   :  { %370 = vmatpush.msrb.mxu1 %v350_v57  ;;  %v592_v57 = vld [vmem:[#allocation2 + $0x108] sm:$0xff] }
 0x207   :  { %v227_v59 = vadd.f32 0.001, %v226_v58  ;;  %v379_v58 = vld [vmem:[#allocation2 + $0xc8] sm:$0xff] }
 0x208   :  { %398 = vmatpush.msrb.mxu2 %v379_v58 }
 0x209   :  { %960 = vrsqrt.f32 %v227_v59  ;;  %vm234_vm9 = vweird.f32 %v227_v59 }
 0x20f   :  { %v961_v60 = vpop.eup %960 }
 0x210   :  { %v229_v61 = vmul.f32 %v961_v60, %v227_v59  ;;  %vm235_vm8 = vweird.f32 %v961_v60  ;;  %v349_v59 = vld [vmem:[#allocation2 + $0xa8] sm:$0xff] }
 0x211   :  { %vm236_vm10 = vmor %vm234_vm9, %vm235_vm8  ;;  %371 = vmatpush.msrb.mxu1 %v349_v59 }
 0x212   :  { %v230_v62 = vmul.f32 %v961_v60, %v229_v61  ;;  %v348_v61 = vld [vmem:[#allocation2 + $0xa0] sm:$0xff] }
 0x213   :  { %372 = vmatpush.msrb.mxu1 %v348_v61 }
 0x214   :  { %v231_v63 = vmul.f32 0.5, %v230_v62  ;;  %v932_v62 = vld [vmem:[%s1268_s2 + $0xc] ss:$0 sm:$0xff] }
 0x216   :  { %v232_v0 = vsub.f32 1.5, %v231_v63 }
 0x218   :  { %v233_v1 = vmul.f32 %v961_v60, %v232_v0 }
 0x21a   :  { %v237_v5 = vsel %vm236_vm10, %v961_v60, %v233_v1  ;;  %v378_v60 = vld [vmem:[#allocation2 + $0xc0] sm:$0xff] }
 0x21b   :  { %v239_v6 = vmul.f32 %v238_v2, %v237_v5  ;;  %399 = vmatpush.msrb.mxu2 %v378_v60  ;;  %v933_v2 = vld [vmem:[%s1268_s2 + $0xd] ss:$0 sm:$0xff] }
 0x21d   :  { %v242_v8 = vmul.f32 %v927_v3, %v239_v6  ;;  %v934_v6 = vld [vmem:[%s1268_s2 + $0xe] ss:$0 sm:$0xff] }
 0x21f   :  { %v245_v9 = vadd.f32 %v928_v7, %v242_v8 }
 0x221   :  { %v246_v10 = vmax.f32 %v245_v9, 0.0 }
 0x223   :  { %897 = vmatmul.msk.f32.vlgmr.msra.gmra.mxu3 %vm38_vm0, %v246_v10 }
 0x2a6   :  { %v274_v12 = vpop.f32.mrf.mxu3 }
 0x2a7   :  { %v275_v13 = vadd.f32 %v929_v11, %v274_v12  ;;  %v528_v11 = vld [vmem:[#allocation2 + $0xf8] sm:$0xff] }
 0x2a8   :  { %v421_v12 = vld [vmem:[#allocation2 + $0x1b8] sm:$0xff]  ;;  %543 = vmatpush.msra.mxu1 %v528_v11 }
 0x2a9   :  { %v277_v15 = vsel %vm38_vm0, %v275_v13, 0.0  ;;  %v285_v16 = vmul.f32 %v275_v13, %v275_v13  ;;  %444 = vmatpush.msrb.mxu3 %v421_v12  ;;  %v495_v12 = vld [vmem:[#allocation2 + $0x1c0] sm:$0xff] }
 0x2aa   :  { %v278_v17 = vrot.slane %v277_v15, 4 }
 0x2ab   :  { %v286_v18 = vsel %vm38_vm0, %v285_v16, 0.0  ;;  %v526_v16 = vld [vmem:[#allocation2 + $0xe8] sm:$0xff] }
 0x2ac   :  { %v279_v19 = vadd.f32 %v278_v17, %v277_v15  ;;  %v287_v20 = vrot.slane %v286_v18, 4  ;;  %v420_v15 = vld [vmem:[#allocation2 + $0x1b0] sm:$0xff]  ;;  %v419_v17 = vld [vmem:[#allocation2 + $0x1a8] sm:$0xff] }
 0x2ad   :  { %445 = vmatpush.msrb.mxu3 %v420_v15 }
 0x2ae   :  { %v280_v21 = vrot.slane %v279_v19, 2  ;;  %v288_v22 = vadd.f32 %v287_v20, %v286_v18  ;;  %v525_v20 = vld [vmem:[#allocation2 + $0xe0] sm:$0xff] }
 0x2af   :  { %446 = vmatpush.msrb.mxu3 %v419_v17 }
 0x2b0   :  { %v281_v23 = vadd.f32 %v280_v21, %v279_v19  ;;  %v289_v24 = vrot.slane %v288_v22, 2  ;;  %v418_v21 = vld [vmem:[#allocation2 + $0x1a0] sm:$0xff] }
 0x2b1   :  { %447 = vmatpush.msrb.mxu3 %v418_v21 }
 0x2b2   :  { %v282_v26 = vrot.slane %v281_v23, 1  ;;  %v290_v27 = vadd.f32 %v289_v24, %v288_v22  ;;  %v1035_v22 = vmov 64  }
 0x2b3   :  { %918 = vset.pattern.permute.xlu1 %v1035_v22  ;;  %919 = vset.pattern.permute.xlu0 %v1035_v22 }
 0x2b4   :  { %v283_v31 = vadd.f32 %v282_v26, %v281_v23  ;;  %v291_v32 = vrot.slane %v290_v27, 1  ;;  %424 = vperm.xlu1 %918, %v1063_v4   ;;  %v937_v26 = vld [vmem:[%s1268_s2 + $0x1d] ss:$0 sm:$0xff] }
 0x2b6   :  { %v284_v34 = vmul.f32 %v283_v31, %v1077_v30  ;;  %v292_v35 = vadd.f32 %v291_v32, %v290_v27 }
 0x2b8   :  { %v293_v36 = vmul.f32 %v292_v35, %v1077_v30  ;;  %v294_v37 = vmul.f32 %v284_v34, %v284_v34  ;;  %v307_v50 = vsub.f32 %v275_v13, %v284_v34  ;;  %v527_v13 = vld [vmem:[#allocation2 + $0xf0] sm:$0xff]  ;;  %v938_v35 = vld [vmem:[%s1268_s2 + $0x1e] ss:$0 sm:$0xff] }
 0x2b9   :  { %544 = vmatpush.msra.mxu1 %v527_v13 }
 0x2ba   :  { %v295_v42 = vsub.f32 %v293_v36, %v294_v37 }
 0x2bb   :  { %545 = vmatpush.msra.mxu1 %v526_v16 }
 0x2bc   :  { %v296_v43 = vadd.f32 0.001, %v295_v42 }
 0x2bd   :  { %546 = vmatpush.msra.mxu1 %v525_v20 }
 0x2be   :  { %962 = vrsqrt.f32 %v296_v43  ;;  %vm303_vm12 = vweird.f32 %v296_v43 }
 0x2c4   :  { %v963_v44 = vpop.eup %962 }
 0x2c5   :  { %v298_v45 = vmul.f32 %v963_v44, %v296_v43  ;;  %vm304_vm11 = vweird.f32 %v963_v44 }
 0x2c6   :  { %vm305_vm13 = vmor %vm303_vm12, %vm304_vm11 }
 0x2c7   :  { %v299_v46 = vmul.f32 %v963_v44, %v298_v45 }
 0x2c9   :  { %v300_v47 = vmul.f32 0.5, %v299_v46 }
 0x2cb   :  { %v301_v48 = vsub.f32 1.5, %v300_v47 }
 0x2cd   :  { %v302_v49 = vmul.f32 %v963_v44, %v301_v48  ;;  %v594_v48 = vld [vmem:[#allocation2 + $0x118] sm:$0xff] }
 0x2ce   :  { %612 = vmatpush.msra.mxu2 %v594_v48 }
 0x2cf   :  { %v306_v52 = vsel %vm305_vm13, %v963_v44, %v302_v49 }
 0x2d0   :  { %v308_v53 = vmul.f32 %v307_v50, %v306_v52 }
 0x2d2   :  { %v311_v54 = vmul.f32 %v930_v51, %v308_v53  ;;  %v593_v53 = vld [vmem:[#allocation2 + $0x110] sm:$0xff] }
 0x2d3   :  { %613 = vmatpush.msra.mxu2 %v593_v53 }
 0x2d4   :  { %v314_v55 = vadd.f32 %v931_v14, %v311_v54 }
 0x2d5   :  { %614 = vmatpush.msra.mxu2 %v592_v57 }
 0x2d6   :  { %v315_v56 = vmax.f32 %v314_v55, 0.0 }
 0x2d8   :  { %898 = vmatmul.msk.f32.vlgmr.msrb.gmra.mxu0 %vm38_vm0, %v315_v56 }
 0x326   :  { %v425_v28 = vpop.permute.xlu1 %424 }
 0x327   :  { %v428_v32 = vmul.f32 %v937_v26, %v425_v28  ;;  %v936_v28 = vld [vmem:[%s1268_s2 + $0x10] ss:$0 sm:$0xff] }
 0x355   :  { %v343_v63 = vpop.f32.mrf.mxu0 }
 0x356   :  { %v344_v0 = vadd.f32 %v932_v62, %v343_v63  ;;  %v591_v62 = vld [vmem:[#allocation2 + $0x100] sm:$0xff] }
 0x357   :  { %615 = vmatpush.msra.mxu2 %v591_v62  ;;  %v663_v62 = vld [vmem:[#allocation2 + $0x138] sm:$0xff] }
 0x358   :  { %v346_v1 = vadd.f32 %v344_v0, %v1107_v40  ;;  %681 = vmatpush.msra.mxu3 %v663_v62  ;;  %v947_v62 = vld [vmem:[%s1268_s2 + $0x16] ss:$0 sm:$0xff] }
 0x35a   :  { %899 = vmatmul.msk.f32.vlgmr.msrb.gmra.mxu1 %vm38_vm0, %v346_v1  ;;  %900 = vmatmul.msk.f32.vlgmr.msrb.gmra.mxu2 %vm38_vm0, %v346_v1 }
 0x3d7   :  { %v374_v3 = vpop.f32.mrf.mxu1 }
 0x3d8   :  { %v375_v5 = vadd.f32 %v933_v2, %v374_v3  ;;  %v498_v3 = vld [vmem:[#allocation2 + $0x1d8] sm:$0xff] }
 0x3d9   :  { %516 = vmatpush.msra.mxu0 %v498_v3 }
 0x3da   :  { %864 = vrot.lane.b32.xlu2 %v375_v5, %s1032_s20 }
 0x3dd   :  { %v401_v7 = vpop.f32.mrf.mxu2 }
 0x3de   :  { %v402_v8 = vadd.f32 %v934_v6, %v401_v7 }
 0x3e0   :  { %v404_v9 = vmul.f32 0.5, %v402_v8 }
 0x3e2   :  { %v405_v40 = vmul.f32 1.442695, %v404_v9  ;;  %868 = vrot.lane.b32.xlu2 %v402_v8, %s1033_s0  ;;  %v497_v8 = vld [vmem:[#allocation2 + $0x1d0] sm:$0xff]  ;;  %v496_v9 = vld [vmem:[#allocation2 + $0x1c8] sm:$0xff] }
 0x3e3   :  { %517 = vmatpush.msra.mxu0 %v497_v8  ;;  %v660_v8 = vld [vmem:[#allocation2 + $0x120] sm:$0xff] }
 0x3e4   :  { %964 = vpow2.f32 %v405_v40 }
 0x3e5   :  { %518 = vmatpush.msra.mxu0 %v496_v9 }
 0x3e7   :  { %519 = vmatpush.msra.mxu0 %v495_v12 }
 0x3ea   :  { %v965_v10 = vpop.eup %964 }
 0x3eb   :  { %408 = vrot.lane.b32.xlu0 %v965_v10, %s1034_s22 }
 0x45d   :  { %v409_v18 = vpop.permute.xlu0 %408 }
 0x45e   :  { %v411_v19 = vmul.f32 %v409_v18, %v1063_v4 }
 0x460   :  { %413 = vrot.lane.b32.xlu0 %v411_v19, %s1033_s0 }
 0x4d2   :  { %v414_v23 = vpop.permute.xlu0 %413 }
 0x4d3   :  { %v416_v24 = vadd.f32 %v414_v23, %v375_v5 }
 0x4d5   :  { %901 = vmatmul.msk.f32.vlgmr.msrb.gmra.mxu3 %vm38_vm0, %v416_v24  ;;  %903 = vmatmul.msk.f32.vlgmr.msra.gmra.mxu1 %vm38_vm0, %v416_v24 }
 0x552   :  { %v548_v27 = vpop.f32.mrf.mxu1 }
 0x553   :  { %v1161_v29 = vadd.f32 %v935_v25, %v548_v27 }
 0x555   :  { %v551_v4 = vsel %vm38_vm0, %v1161_v29, 0.0  ;;  %v559_v31 = vmul.f32 %v1161_v29, %v1161_v29 }
 0x556   :  { %v552_v33 = vrot.slane %v551_v4, 4 }
 0x557   :  { %v560_v34 = vsel %vm38_vm0, %v559_v31, 0.0 }
 0x558   :  { %v553_v36 = vadd.f32 %v552_v33, %v551_v4  ;;  %v561_v37 = vrot.slane %v560_v34, 4  ;;  %v449_v38 = vpop.f32.mrf.mxu3 }
 0x559   :  { %v450_v39 = vadd.f32 %v449_v38, %v428_v32 }
 0x55a   :  { %v554_v41 = vrot.slane %v553_v36, 2  ;;  %v562_v42 = vadd.f32 %v561_v37, %v560_v34  ;;  %v940_v34 = vld [vmem:[%s1268_s2 + $0x11] ss:$0 sm:$0xff] }
 0x55b   :  { %v1171_v43 = vadd.f32 %v938_v35, %v450_v39 }
 0x55c   :  { %v555_v44 = vadd.f32 %v554_v41, %v553_v36  ;;  %v563_v45 = vrot.slane %v562_v42, 2 }
 0x55d   :  { %v455_v46 = vsel %vm38_vm0, %v1171_v43, 0.0  ;;  %v463_v47 = vmul.f32 %v1171_v43, %v1171_v43 }
 0x55e   :  { %v556_v49 = vrot.slane %v555_v44, 1  ;;  %v564_v50 = vadd.f32 %v563_v45, %v562_v42  ;;  %v456_v51 = vrot.slane %v455_v46, 4 }
 0x55f   :  { %v464_v52 = vsel %vm38_vm0, %v463_v47, 0.0  ;;  %v941_v47 = vld [vmem:[%s1268_s2 + $0x20] ss:$0 sm:$0xff] }
 0x560   :  { %v557_v14 = vadd.f32 %v556_v49, %v555_v44  ;;  %v565_v54 = vrot.slane %v564_v50, 1  ;;  %v457_v55 = vadd.f32 %v456_v51, %v455_v46  ;;  %v465_v56 = vrot.slane %v464_v52, 4  ;;  %v939_v44 = vld [vmem:[%s1268_s2 + $0x1f] ss:$0 sm:$0xff] }
 0x562   :  { %v558_v58 = vmul.f32 %v557_v14, %v1077_v30  ;;  %v566_v59 = vadd.f32 %v565_v54, %v564_v50  ;;  %v458_v60 = vrot.slane %v457_v55, 2  ;;  %v466_v61 = vadd.f32 %v465_v56, %v464_v52 }
 0x564   :  { %v567_v63 = vmul.f32 %v566_v59, %v1077_v30  ;;  %v568_v0 = vmul.f32 %v558_v58, %v558_v58  ;;  %v459_v1 = vadd.f32 %v458_v60, %v457_v55  ;;  %v467_v2 = vrot.slane %v466_v61, 2 }
 0x565   :  { %v581_v27 = vsub.f32 %v1161_v29, %v558_v58 }
 0x566   :  { %v569_v5 = vsub.f32 %v567_v63, %v568_v0  ;;  %v460_v6 = vrot.slane %v459_v1, 1  ;;  %v468_v7 = vadd.f32 %v467_v2, %v466_v61 }
 0x568   :  { %v570_v40 = vadd.f32 0.001, %v569_v5  ;;  %v461_v10 = vadd.f32 %v460_v6, %v459_v1  ;;  %v469_v11 = vrot.slane %v468_v7, 1  ;;  %v662_v1 = vld [vmem:[#allocation2 + $0x130] sm:$0xff]  ;;  %v661_v5 = vld [vmem:[#allocation2 + $0x128] sm:$0xff] }
 0x569   :  { %682 = vmatpush.msra.mxu3 %v662_v1  ;;  %v948_v1 = vld [vmem:[%s1268_s2 + $0x17] ss:$0 sm:$0xff] }
 0x56a   :  { %966 = vrsqrt.f32 %v570_v40  ;;  %v462_v13 = vmul.f32 %v461_v10, %v1077_v30  ;;  %v470_v15 = vadd.f32 %v469_v11, %v468_v7  ;;  %vm577_vm15 = vweird.f32 %v570_v40 }
 0x56b   :  { %683 = vmatpush.msra.mxu3 %v661_v5 }
 0x56c   :  { %v472_v16 = vmul.f32 %v462_v13, %v462_v13  ;;  %v471_v17 = vmul.f32 %v470_v15, %v1077_v30  ;;  %v485_v42 = vsub.f32 %v1171_v43, %v462_v13  ;;  %v942_v43 = vld [vmem:[%s1268_s2 + $0x12] ss:$0 sm:$0xff] }
 0x56d   :  { %684 = vmatpush.msra.mxu3 %v660_v8 }
 0x56e   :  { %v473_v18 = vsub.f32 %v471_v17, %v472_v16 }
 0x570   :  { %v967_v19 = vpop.eup %966  ;;  %v474_v21 = vadd.f32 0.001, %v473_v18 }
 0x571   :  { %v572_v20 = vmul.f32 %v967_v19, %v570_v40  ;;  %vm578_vm14 = vweird.f32 %v967_v19 }
 0x572   :  { %968 = vrsqrt.f32 %v474_v21  ;;  %vm579_vm1 = vmor %vm577_vm15, %vm578_vm14  ;;  %vm481_vm3 = vweird.f32 %v474_v21  ;;  %vm872_vm14 = vcmask 523264   ;;  %vm874_vm15 = vcmask 785408  }
 0x573   :  { %v573_v22 = vmul.f32 %v967_v19, %v572_v20  ;;  %v943_v20 = vld [vmem:[%s1268_s2 + $0x13] ss:$0 sm:$0xff] }
 0x575   :  { %v574_v23 = vmul.f32 0.5, %v573_v22 }
 0x577   :  { %v575_v24 = vsub.f32 1.5, %v574_v23  ;;  %v944_v23 = vld [vmem:[%s1268_s2 + $0x14] ss:$0 sm:$0xff] }
 0x578   :  { %v969_v25 = vpop.eup %968 }
 0x579   :  { %v576_v26 = vmul.f32 %v967_v19, %v575_v24  ;;  %v476_v4 = vmul.f32 %v969_v25, %v474_v21  ;;  %vm482_vm2 = vweird.f32 %v969_v25 }
 0x57a   :  { %vm483_vm4 = vmor %vm481_vm3, %vm482_vm2 }
 0x57b   :  { %v580_v31 = vsel %vm579_vm1, %v967_v19, %v576_v26  ;;  %v477_v33 = vmul.f32 %v969_v25, %v476_v4 }
 0x57c   :  { %v582_v32 = vmul.f32 %v581_v27, %v580_v31  ;;  %v946_v27 = vld [vmem:[%s1268_s2 + $0x15] ss:$0 sm:$0xff] }
 0x57d   :  { %v478_v36 = vmul.f32 0.5, %v477_v33 }
 0x57e   :  { %v585_v35 = vmul.f32 %v936_v28, %v582_v32 }
 0x57f   :  { %v479_v37 = vsub.f32 1.5, %v478_v36 }
 0x580   :  { %v588_v38 = vadd.f32 %v940_v34, %v585_v35 }
 0x581   :  { %v480_v39 = vmul.f32 %v969_v25, %v479_v37 }
 0x582   :  { %v589_v41 = vmax.f32 %v588_v38, 0.0 }
 0x583   :  { %v484_v45 = vsel %vm483_vm4, %v969_v25, %v480_v39 }
 0x584   :  { %904 = vmatmul.msk.f32.vlgmr.msra.gmra.mxu2 %vm38_vm0, %v589_v41  ;;  %v486_v46 = vmul.f32 %v485_v42, %v484_v45  ;;  %v732_v45 = vld [vmem:[#allocation2 + $0x150] sm:$0xff] }
 0x586   :  { %v489_v48 = vmul.f32 %v939_v44, %v486_v46  ;;  %v733_v44 = vld [vmem:[#allocation2 + $0x158] sm:$0xff] }
 0x587   :  { %751 = vmatpush.msrb.mxu0 %v733_v44 }
 0x588   :  { %v492_v49 = vadd.f32 %v941_v47, %v489_v48  ;;  %v731_v47 = vld [vmem:[#allocation2 + $0x148] sm:$0xff] }
 0x589   :  { %752 = vmatpush.msrb.mxu0 %v732_v45 }
 0x58a   :  { %v493_v50 = vmax.f32 %v492_v49, 0.0 }
 0x58b   :  { %753 = vmatpush.msrb.mxu0 %v731_v47 }
 0x58c   :  { %902 = vmatmul.msk.f32.vlgmr.msra.gmra.mxu0 %vm38_vm0, %v493_v50  ;;  %v730_v50 = vld [vmem:[#allocation2 + $0x140] sm:$0xff] }
 0x58d   :  { %754 = vmatpush.msrb.mxu0 %v730_v50 }
 0x607   :  { %v617_v51 = vpop.f32.mrf.mxu2 }
 0x608   :  { %v618_v52 = vadd.f32 %v942_v43, %v617_v51 }
 0x60a   :  { %v620_v53 = vsel %vm38_vm0, %v618_v52, 0.0  ;;  %v628_v14 = vmul.f32 %v618_v52, %v618_v52 }
 0x60b   :  { %v621_v54 = vrot.slane %v620_v53, 4 }
 0x60c   :  { %v629_v55 = vsel %vm38_vm0, %v628_v14, 0.0 }
 0x60d   :  { %v622_v56 = vadd.f32 %v621_v54, %v620_v53  ;;  %v630_v57 = vrot.slane %v629_v55, 4 }
 0x60f   :  { %v623_v58 = vrot.slane %v622_v56, 2  ;;  %v631_v59 = vadd.f32 %v630_v57, %v629_v55 }
 0x611   :  { %v624_v60 = vadd.f32 %v623_v58, %v622_v56  ;;  %v632_v61 = vrot.slane %v631_v59, 2 }
 0x613   :  { %v625_v63 = vrot.slane %v624_v60, 1  ;;  %v633_v0 = vadd.f32 %v632_v61, %v631_v59 }
 0x615   :  { %v626_v2 = vadd.f32 %v625_v63, %v624_v60  ;;  %v634_v3 = vrot.slane %v633_v0, 1 }
 0x617   :  { %v627_v6 = vmul.f32 %v626_v2, %v1077_v30  ;;  %v635_v7 = vadd.f32 %v634_v3, %v633_v0 }
 0x619   :  { %v636_v9 = vmul.f32 %v635_v7, %v1077_v30  ;;  %v637_v40 = vmul.f32 %v627_v6, %v627_v6  ;;  %v650_v19 = vsub.f32 %v618_v52, %v627_v6  ;;  %v1233_v6 = vpop.f32.mrf.mxu0  ;;  %v949_v7 = vld [vmem:[%s1268_s2 + $0x18] ss:$0 sm:$0xff] }
 0x61b   :  { %v638_v10 = vsub.f32 %v636_v9, %v637_v40 }
 0x61d   :  { %v639_v11 = vadd.f32 0.001, %v638_v10 }
 0x61f   :  { %970 = vrsqrt.f32 %v639_v11  ;;  %vm646_vm6 = vweird.f32 %v639_v11 }
 0x625   :  { %v971_v12 = vpop.eup %970 }
 0x626   :  { %v641_v13 = vmul.f32 %v971_v12, %v639_v11  ;;  %vm647_vm5 = vweird.f32 %v971_v12 }
 0x627   :  { %vm648_vm7 = vmor %vm646_vm6, %vm647_vm5 }
 0x628   :  { %v642_v15 = vmul.f32 %v971_v12, %v641_v13 }
 0x62a   :  { %v643_v16 = vmul.f32 0.5, %v642_v15 }
 0x62c   :  { %v644_v17 = vsub.f32 1.5, %v643_v16 }
 0x62e   :  { %v645_v18 = vmul.f32 %v971_v12, %v644_v17 }
 0x630   :  { %v649_v21 = vsel %vm648_vm7, %v971_v12, %v645_v18 }
 0x631   :  { %v651_v22 = vmul.f32 %v650_v19, %v649_v21 }
 0x633   :  { %v654_v24 = vmul.f32 %v943_v20, %v651_v22  ;;  %v802_v20 = vld [vmem:[#allocation2 + $0x178] sm:$0xff] }
 0x634   :  { %820 = vmatpush.msrb.mxu1 %v802_v20 }
 0x635   :  { %v657_v25 = vadd.f32 %v944_v23, %v654_v24  ;;  %v801_v23 = vld [vmem:[#allocation2 + $0x170] sm:$0xff] }
 0x636   :  { %821 = vmatpush.msrb.mxu1 %v801_v23 }
 0x637   :  { %v658_v26 = vmax.f32 %v657_v25, 0.0 }
 0x639   :  { %905 = vmatmul.msk.f32.vlgmr.msra.gmra.mxu3 %vm38_vm0, %v658_v26  ;;  %v800_v26 = vld [vmem:[#allocation2 + $0x168] sm:$0xff] }
 0x63a   :  { %822 = vmatpush.msrb.mxu1 %v800_v26 }
 0x6bc   :  { %v686_v28 = vpop.f32.mrf.mxu3 }
 0x6bd   :  { %v687_v4 = vadd.f32 %v946_v27, %v686_v28 }
 0x6bf   :  { %v1216_v31 = vadd.f32 %v687_v4, %v1161_v29  ;;  %v799_v4 = vld [vmem:[#allocation2 + $0x160] sm:$0xff] }
 0x6c0   :  { %823 = vmatpush.msrb.mxu1 %v799_v4 }
 0x6c1   :  { %v690_v32 = vsel %vm38_vm0, %v1216_v31, 0.0  ;;  %v698_v33 = vmul.f32 %v1216_v31, %v1216_v31 }
 0x6c2   :  { %v691_v34 = vrot.slane %v690_v32, 4 }
 0x6c3   :  { %v699_v35 = vsel %vm38_vm0, %v698_v33, 0.0 }
 0x6c4   :  { %v692_v36 = vadd.f32 %v691_v34, %v690_v32  ;;  %v700_v37 = vrot.slane %v699_v35, 4  ;;  %v833_v34 = vld [vmem:[#allocation2 + $0x198] sm:$0xff] }
 0x6c5   :  { %851 = vmatpush.msrb.mxu2 %v833_v34 }
 0x6c6   :  { %v693_v38 = vrot.slane %v692_v36, 2  ;;  %v701_v39 = vadd.f32 %v700_v37, %v699_v35  ;;  %v832_v35 = vld [vmem:[#allocation2 + $0x190] sm:$0xff] }
 0x6c7   :  { %852 = vmatpush.msrb.mxu2 %v832_v35 }
 0x6c8   :  { %v694_v41 = vadd.f32 %v693_v38, %v692_v36  ;;  %v702_v42 = vrot.slane %v701_v39, 2 }
 0x6ca   :  { %v695_v29 = vrot.slane %v694_v41, 1  ;;  %v703_v46 = vadd.f32 %v702_v42, %v701_v39 }
 0x6cc   :  { %v696_v48 = vadd.f32 %v695_v29, %v694_v41  ;;  %v704_v49 = vrot.slane %v703_v46, 1 }
 0x6ce   :  { %v697_v43 = vmul.f32 %v696_v48, %v1077_v30  ;;  %v705_v51 = vadd.f32 %v704_v49, %v703_v46  ;;  %v951_v48 = vld [vmem:[%s1268_s2 + $0x1a] ss:$0 sm:$0xff] }
 0x6d0   :  { %v706_v52 = vmul.f32 %v705_v51, %v1077_v30  ;;  %v707_v53 = vmul.f32 %v697_v43, %v697_v43  ;;  %v720_v61 = vsub.f32 %v1216_v31, %v697_v43  ;;  %v831_v51 = vld [vmem:[#allocation2 + $0x188] sm:$0xff] }
 0x6d1   :  { %853 = vmatpush.msrb.mxu2 %v831_v51 }
 0x6d2   :  { %v708_v14 = vsub.f32 %v706_v52, %v707_v53  ;;  %v830_v52 = vld [vmem:[#allocation2 + $0x180] sm:$0xff]  ;;  %v952_v53 = vld [vmem:[%s1268_s2 + $0x1b] ss:$0 sm:$0xff] }
 0x6d3   :  { %854 = vmatpush.msrb.mxu2 %v830_v52 }
 0x6d4   :  { %v709_v54 = vadd.f32 0.001, %v708_v14 }
 0x6d6   :  { %972 = vrsqrt.f32 %v709_v54  ;;  %vm716_vm9 = vweird.f32 %v709_v54 }
 0x6dc   :  { %v973_v55 = vpop.eup %972 }
 0x6dd   :  { %v711_v56 = vmul.f32 %v973_v55, %v709_v54  ;;  %vm717_vm8 = vweird.f32 %v973_v55 }
 0x6de   :  { %vm718_vm10 = vmor %vm716_vm9, %vm717_vm8 }
 0x6df   :  { %v712_v57 = vmul.f32 %v973_v55, %v711_v56  ;;  %v953_v56 = vld [vmem:[%s1268_s2 + $0x1c] ss:$0 sm:$0xff] }
 0x6e1   :  { %v713_v58 = vmul.f32 0.5, %v712_v57 }
 0x6e3   :  { %v714_v59 = vsub.f32 1.5, %v713_v58 }
 0x6e5   :  { %v715_v60 = vmul.f32 %v973_v55, %v714_v59  ;;  %v865_v59 = vpop.permute.xlu2 %864 }
 0x6e7   :  { %v719_v63 = vsel %vm718_vm10, %v973_v55, %v715_v60  ;;  %v945_v60 = vld [vmem:[%s1268_s2 + $0x21] ss:$0 sm:$0xff] }
 0x6e8   :  { %v721_v0 = vmul.f32 %v720_v61, %v719_v63  ;;  %v522_v61 = vadd.f32 %v945_v60, %v1233_v6 }
 0x6ea   :  { %v724_v2 = vmul.f32 %v947_v62, %v721_v0 }
 0x6ec   :  { %v727_v3 = vadd.f32 %v948_v1, %v724_v2 }
 0x6ed   :  { %v869_v63 = vpop.permute.xlu2 %868 }
 0x6ee   :  { %v728_v5 = vmax.f32 %v727_v3, 0.0 }
 0x6f0   :  { %906 = vmatmul.msk.f32.vlgmr.msrb.gmra.mxu0 %vm38_vm0, %v728_v5 }
 0x76d   :  { %v756_v8 = vpop.f32.mrf.mxu0 }
 0x76e   :  { %v757_v9 = vadd.f32 %v949_v7, %v756_v8 }
 0x770   :  { %v759_v40 = vsel %vm38_vm0, %v757_v9, 0.0  ;;  %v767_v10 = vmul.f32 %v757_v9, %v757_v9 }
 0x771   :  { %v760_v11 = vrot.slane %v759_v40, 4 }
 0x772   :  { %v768_v12 = vsel %vm38_vm0, %v767_v10, 0.0 }
 0x773   :  { %v761_v13 = vadd.f32 %v760_v11, %v759_v40  ;;  %v769_v15 = vrot.slane %v768_v12, 4 }
 0x775   :  { %v762_v16 = vrot.slane %v761_v13, 2  ;;  %v770_v17 = vadd.f32 %v769_v15, %v768_v12 }
 0x777   :  { %v763_v18 = vadd.f32 %v762_v16, %v761_v13  ;;  %v771_v19 = vrot.slane %v770_v17, 2 }
 0x779   :  { %v764_v21 = vrot.slane %v763_v18, 1  ;;  %v772_v22 = vadd.f32 %v771_v19, %v770_v17 }
 0x77b   :  { %v765_v24 = vadd.f32 %v764_v21, %v763_v18  ;;  %v773_v25 = vrot.slane %v772_v22, 1 }
 0x77d   :  { %v766_v27 = vmul.f32 %v765_v24, %v1077_v30  ;;  %v774_v28 = vadd.f32 %v773_v25, %v772_v22 }
 0x77f   :  { %v775_v32 = vmul.f32 %v774_v28, %v1077_v30  ;;  %v776_v33 = vmul.f32 %v766_v27, %v766_v27  ;;  %v789_v29 = vsub.f32 %v757_v9, %v766_v27  ;;  %v950_v30 = vld [vmem:[%s1268_s2 + $0x19] ss:$0 sm:$0xff] }
 0x781   :  { %v777_v36 = vsub.f32 %v775_v32, %v776_v33 }
 0x783   :  { %v778_v37 = vadd.f32 0.001, %v777_v36 }
 0x785   :  { %974 = vrsqrt.f32 %v778_v37  ;;  %vm785_vm12 = vweird.f32 %v778_v37 }
 0x78b   :  { %v975_v38 = vpop.eup %974 }
 0x78c   :  { %v780_v39 = vmul.f32 %v975_v38, %v778_v37  ;;  %vm786_vm11 = vweird.f32 %v975_v38 }
 0x78d   :  { %vm787_vm13 = vmor %vm785_vm12, %vm786_vm11 }
 0x78e   :  { %v781_v41 = vmul.f32 %v975_v38, %v780_v39 }
 0x790   :  { %v782_v42 = vmul.f32 0.5, %v781_v41 }
 0x792   :  { %v783_v44 = vsub.f32 1.5, %v782_v42 }
 0x794   :  { %v784_v45 = vmul.f32 %v975_v38, %v783_v44 }
 0x796   :  { %v788_v46 = vsel %vm787_vm13, %v975_v38, %v784_v45 }
 0x797   :  { %v790_v47 = vmul.f32 %v789_v29, %v788_v46 }
 0x799   :  { %v793_v49 = vmul.f32 %v950_v30, %v790_v47 }
 0x79b   :  { %v796_v50 = vadd.f32 %v951_v48, %v793_v49 }
 0x79d   :  { %v797_v43 = vmax.f32 %v796_v50, 0.0 }
 0x79f   :  { %907 = vmatmul.msk.f32.vlgmr.msrb.gmra.mxu1 %vm38_vm0, %v797_v43 }
 0x81c   :  { %v825_v14 = vpop.f32.mrf.mxu1 }
 0x81d   :  { %v826_v54 = vadd.f32 %v952_v53, %v825_v14 }
 0x81f   :  { %v828_v55 = vadd.f32 %v826_v54, %v1216_v31 }
 0x821   :  { %908 = vmatmul.msk.f32.vlgmr.msrb.gmra.mxu2 %vm38_vm0, %v828_v55 }
 0x8a4   :  { %v856_v57 = vpop.f32.mrf.mxu2 }
 0x8a5   :  { %v857_v58 = vadd.f32 %v953_v56, %v856_v57 }
 0x8a7   :  { %860 = vrot.lane.b32.xlu1 %v857_v58, %s1034_s22 }
 0x919   :  { %v861_v31 = vpop.permute.xlu1 %860 }
 0x91a   :  { %v871_v62 = vsel %vm38_vm0, %v522_v61, %v861_v31 }
 0x91b   :  { %v873_v0 = vsel %vm872_vm14, %v871_v62, %v865_v59 }
 0x91c   :  { %v875_v1 = vsel %vm874_vm15, %v873_v0, %v869_v63 }
 0x91d   :  { %876 = vst [vmem:[#allocation5] sm:$0xff] %v875_v1 }
 0x91e   :  { %887 = dma.vmem_to_hbm [thread:$0]  %s883_s7, 128, %s885_s10, [#allocation4]  }
 0x91f   :  { %1026 = dma.done.wait [#allocation4], 128  }
 0x920   :  { %1027 = vsyncadd [#allocation4], 4294967168 }
 0x921   :  { %892 = vsyncpa [#allocation3], 1 }
 0x922   :  { %893 = vsyncpa [#allocation4], 1 }

</bundles_post_ra>
